<compile_context>
chip_gen: v7x
topology: tpu7x:2x2x1
jax: 0.10.0
libtpu: 0.0.40
codegen_flags: <defaults>
</compile_context>

<pallas_src>
import numpy as np
import jax
import jax.numpy as jnp
from jax.experimental import pallas as pl
from jax.experimental.pallas import tpu as pltpu


_VMEM_LIMIT = 64 * 1024 * 1024   # generous scoped-VMEM limit (<= physical on v5e/v6e/v7x)


# ---------------------------------------------------------------------------
# Kernels
# ---------------------------------------------------------------------------

def _encoder_l1_kernel(adj_ref, xw_ref, w23_ref, hw_ref, acc_ref):
    """acc += adj_tile @ xw_ktile; at last K step: hw_tile = relu(acc) @ [W2 | W3]."""
    k = pl.program_id(1)

    @pl.when(k == 0)
    def _init():
        acc_ref[...] = jnp.zeros_like(acc_ref)

    acc_ref[...] += jnp.dot(adj_ref[...], xw_ref[...],
                            preferred_element_type=jnp.float32)

    @pl.when(k == pl.num_programs(1) - 1)
    def _finalize():
        hidden = jnp.maximum(acc_ref[...], 0.0).astype(w23_ref.dtype)
        hw_ref[...] = jnp.dot(hidden, w23_ref[...],
                              preferred_element_type=jnp.float32).astype(hw_ref.dtype)


def _encoder_l2_kernel(adj_ref, hw_ref, out_ref, acc_ref):
    """acc += adj_tile @ hw_ktile; at last K step write mu|logstd tile (f32)."""
    k = pl.program_id(1)

    @pl.when(k == 0)
    def _init():
        acc_ref[...] = jnp.zeros_like(acc_ref)

    acc_ref[...] += jnp.dot(adj_ref[...], hw_ref[...],
                            preferred_element_type=jnp.float32)

    @pl.when(k == pl.num_programs(1) - 1)
    def _finalize():
        out_ref[...] = acc_ref[...].astype(out_ref.dtype)


def _decoder_kernel(zr_ref, zc_ref, apred_ref):
    """A_pred tile = sigmoid(z_rows @ z_cols^T) without materializing a transpose."""
    logits = jax.lax.dot_general(
        zr_ref[...], zc_ref[...],
        dimension_numbers=(((1,), (1,)), ((), ())),
        preferred_element_type=jnp.float32)
    apred_ref[...] = jax.nn.sigmoid(logits).astype(apred_ref.dtype)


# ---------------------------------------------------------------------------
# Wrapper
# ---------------------------------------------------------------------------

def _pick_tile(n, target, align):
    """Largest multiple of `align` <= target that divides n, else the full dim."""
    if n <= target:
        return n
    t = (min(target, n) // align) * align
    while t >= align:
        if n % t == 0:
            return t
        t -= align
    return n   # fallback: single block (no aligned divisor exists)


def vgae_forward(X, adj, W1, W2, W3, *, compute_dtype=jnp.bfloat16,
                 row_tile=512, k_tile=2048, dec_row_tile=512, dec_col_tile=2048):
    N, D = X.shape
    H1 = W1.shape[1]
    H2 = W2.shape[1]
    H2x2 = 2 * H2
    cdt = jnp.dtype(compute_dtype)
    itemsize = cdt.itemsize
    sub_align = max(8, 32 // itemsize)     # dtype-aware sublane alignment (8 f32 / 16 bf16)

    # Only cast adj when it does not already arrive in the compute dtype (an
    # unnecessary astype would add a full extra N^2 read+write HBM pass).
    adjc = adj if adj.dtype == cdt else adj.astype(cdt)
    Xc = X.astype(cdt)
    W1c = W1.astype(cdt)
    # Fuse gcn_mean / gcn_logstddev weights so layer 2 is one matmul with a
    # 2*H2-lane-wide output.
    W23 = jnp.concatenate([W2, W3], axis=1).astype(cdt)          # (H1, 2*H2)

    # --- Stage 0: xw = X @ W1 hoisted out of the row-tiled kernel (tiny matmul)
    xw = jnp.dot(Xc, W1c, preferred_element_type=jnp.float32).astype(cdt)   # (N, H1)

    tm = _pick_tile(N, row_tile, sub_align)   # encoder row tile
    tk = _pick_tile(N, k_tile, 128)           # adj column (K) tile -> caps VMEM at 2*tm*tk

    # --- Stage 1: hw = relu(adj @ xw) @ W23  -> (N, 2*H2) -------------------
    hw = pl.pallas_call(
        _encoder_l1_kernel,
        grid=(N // tm, N // tk),
        in_specs=[
            pl.BlockSpec((tm, tk), lambda i, k: (i, k)),          # adj (row, K) tile
            pl.BlockSpec((tk, H1), lambda i, k: (k, 0)),          # xw K tile
            pl.BlockSpec((H1, H2x2), lambda i, k: (0, 0)),        # fused W2|W3 resident
        ],
        out_specs=pl.BlockSpec((tm, H2x2), lambda i, k: (i, 0)),  # resident across K
        out_shape=jax.ShapeDtypeStruct((N, H2x2), cdt),
        scratch_shapes=[pltpu.VMEM((tm, H1), jnp.float32)],
        compiler_params=pltpu.CompilerParams(
            dimension_semantics=("parallel", "arbitrary"),
            vmem_limit_bytes=_VMEM_LIMIT),
        cost_estimate=pl.CostEstimate(
            flops=2 * N * N * H1 + 2 * N * H1 * H2x2,
            transcendentals=0,
            bytes_accessed=(N * N * itemsize + N * H1 * itemsize
                            + H1 * H2x2 * itemsize + N * H2x2 * itemsize)),
    )(adjc, xw, W23)

    # --- Stage 2: mu_logstd = adj @ hw  -> (N, 2*H2), f32 -------------------
    mu_logstd = pl.pallas_call(
        _encoder_l2_kernel,
        grid=(N // tm, N // tk),
        in_specs=[
            pl.BlockSpec((tm, tk), lambda i, k: (i, k)),          # adj (row, K) tile
            pl.BlockSpec((tk, H2x2), lambda i, k: (k, 0)),        # hw K tile
        ],
        out_specs=pl.BlockSpec((tm, H2x2), lambda i, k: (i, 0)),
        out_shape=jax.ShapeDtypeStruct((N, H2x2), jnp.float32),
        scratch_shapes=[pltpu.VMEM((tm, H2x2), jnp.float32)],
        compiler_params=pltpu.CompilerParams(
            dimension_semantics=("parallel", "arbitrary"),
            vmem_limit_bytes=_VMEM_LIMIT),
        cost_estimate=pl.CostEstimate(
            flops=2 * N * N * H2x2,
            transcendentals=0,
            bytes_accessed=N * N * itemsize + N * H2x2 * itemsize + N * H2x2 * 4),
    )(adjc, hw)

    mu = mu_logstd[:, :H2]
    logstd = mu_logstd[:, H2:]

    # Eval-mode reparameterize: z = mu (f32).
    z = mu

    # --- Stage 3: tiled decoder A_pred = sigmoid(z z^T) -> (N, N) -----------
    # Decoder tiles are decoupled from the encoder row tile and made large:
    # the N^2 f32 output write dominates HBM traffic, so fewer/bigger
    # lane-dense tiles cut per-step overhead. The decoder reads the returned
    # f32 z directly (z inputs are tiny vs the output write).
    tmd = _pick_tile(N, dec_row_tile, 8)
    tnd = _pick_tile(N, dec_col_tile, 128)

    A_pred = pl.pallas_call(
        _decoder_kernel,
        grid=(N // tmd, N // tnd),
        in_specs=[
            pl.BlockSpec((tmd, H2), lambda i, j: (i, 0)),         # z row tile
            pl.BlockSpec((tnd, H2), lambda i, j: (j, 0)),         # z col tile
        ],
        out_specs=pl.BlockSpec((tmd, tnd), lambda i, j: (i, j)),  # lane-dense output
        out_shape=jax.ShapeDtypeStruct((N, N), jnp.float32),
        compiler_params=pltpu.CompilerParams(
            dimension_semantics=("parallel", "parallel"),
            vmem_limit_bytes=_VMEM_LIMIT),
        cost_estimate=pl.CostEstimate(
            flops=2 * N * N * H2,
            transcendentals=N * N,
            bytes_accessed=N * N * 4 + 2 * N * H2 * 4),
    )(z, z)

    return z, mu, logstd, A_pred


# ---------------------------------------------------------------------------
# Reference + test
# ---------------------------------------------------------------------------

def glorot_init(key, in_dim, out_dim):
    r = np.sqrt(6.0 / (in_dim + out_dim))
    return jax.random.uniform(key, (in_dim, out_dim),
                              dtype=jnp.float32, minval=-r, maxval=r)


def vgae_reference(X, adj, W1, W2, W3):
    hidden = jax.nn.relu(adj @ (X @ W1))
    mu = adj @ (hidden @ W2)
    logstd = adj @ (hidden @ W3)
    z = mu
    A_pred = jax.nn.sigmoid(z @ z.T)
    return z, mu, logstd, A_pred


if __name__ == "__main__":
    key = jax.random.PRNGKey(0)
    kx, ka, k1, k2, k3 = jax.random.split(key, 5)

    # Small shapes consistent with the module (real graphs: N in the thousands).
    N, D, H1, H2 = 512, 64, 32, 16

    X = jax.random.normal(kx, (N, D), dtype=jnp.float32)

    # Symmetric, degree-normalized adjacency with self loops.
    A = (jax.random.uniform(ka, (N, N)) < 0.02).astype(jnp.float32)
    A = jnp.maximum(A, A.T) + jnp.eye(N, dtype=jnp.float32)
    dinv = 1.0 / jnp.sqrt(jnp.sum(A, axis=1))
    adj = A * dinv[:, None] * dinv[None, :]

    # Deterministic glorot-style weights (shapes from GraphConvSparse.__init__).
    W1 = glorot_init(k1, D, H1)
    W2 = glorot_init(k2, H1, H2)
    W3 = glorot_init(k3, H1, H2)

    # Scalar params a=0.8, b=7 (and decoder a=1.65, b=10) exist in the module
    # but are unused on the 'dot' decoder path.

    z_r, mu_r, logstd_r, A_r = vgae_reference(X, adj, W1, W2, W3)

    # f32 path with small explicit tiles: exercises the K-accumulator and the
    # multi-step (row, K) / (row, col) grids. Tight check against the reference.
    z, mu, logstd, A_pred = vgae_forward(
        X, adj, W1, W2, W3, compute_dtype=jnp.float32,
        row_tile=256, k_tile=256, dec_row_tile=256, dec_col_tile=256)
    jax.block_until_ready((z, mu, logstd, A_pred))
    np.testing.assert_allclose(np.asarray(mu), np.asarray(mu_r),
                               rtol=1e-4, atol=1e-4)
    np.testing.assert_allclose(np.asarray(logstd), np.asarray(logstd_r),
                               rtol=1e-4, atol=1e-4)
    np.testing.assert_allclose(np.asarray(A_pred), np.asarray(A_r),
                               rtol=1e-4, atol=1e-4)

    # Production bf16 path (default tiles); adj supplied already in bf16 so the
    # wrapper does not add an extra N^2 cast pass. Looser tolerance vs f32 ref.
    adj_bf16 = adj.astype(jnp.bfloat16)
    zb, mub, logstdb, A_predb = vgae_forward(X, adj_bf16, W1, W2, W3)
    jax.block_until_ready((zb, mub, logstdb, A_predb))
    np.testing.assert_allclose(np.asarray(mub), np.asarray(mu_r),
                               rtol=6e-2, atol=6e-2)
    np.testing.assert_allclose(np.asarray(logstdb), np.asarray(logstd_r),
                               rtol=6e-2, atol=6e-2)
    np.testing.assert_allclose(np.asarray(A_predb), np.asarray(A_r),
                               rtol=6e-2, atol=6e-2)

    print("KERNEL_OK")
</pallas_src>

<mosaic_0001>
module attributes {stable_mosaic.version = 11 : i64} {
  func.func @_encoder_l1_kernel(%arg0: i32, %arg1: i32, %arg2: memref<256x256xf32, #tpu.memory_space<vmem>>, %arg3: memref<256x32xf32, #tpu.memory_space<vmem>>, %arg4: memref<32x32xf32, #tpu.memory_space<vmem>>, %arg5: memref<256x32xf32, #tpu.memory_space<vmem>>, %arg6: memref<256x32xf32, #tpu.memory_space<vmem>>) attributes {dimension_semantics = [#tpu.dimension_semantics<parallel>, #tpu.dimension_semantics<arbitrary>], iteration_bounds = array<i64: 2, 2>, scalar_prefetch = 0 : i64, scratch_operands = 1 : i64, tpu.core_type = #tpu.core_type<tc>, window_params = [{transform_indices = @transform_0, window_bounds = array<i64: 256, 256>}, {transform_indices = @transform_1, window_bounds = array<i64: 256, 32>}, {pipeline_mode = #tpu.pipeline_mode<synchronous>, transform_indices = @transform_2, window_bounds = array<i64: 32, 32>}, {transform_indices = @transform_3, window_bounds = array<i64: 256, 32>}]} {
    %c0_i32 = arith.constant 0 : i32
    %0 = arith.cmpi eq, %arg1, %c0_i32 : i32
    %1 = arith.extui %0 : i1 to i32
    %c0_i32_0 = arith.constant 0 : i32
    %2 = arith.cmpi ne, %1, %c0_i32_0 : i32
    scf.if %2 {
      %cst_9 = arith.constant 0.000000e+00 : f32
      %12 = vector.broadcast %cst_9 : f32 to vector<256x32xf32>
      %c0_10 = arith.constant 0 : index
      %c0_11 = arith.constant 0 : index
      %13 = vector.load %arg6[%c0_10, %c0_11] : memref<256x32xf32, #tpu.memory_space<vmem>>, vector<256x32xf32>
      tpu.vector_store %arg6[%c0_10, %c0_11], %12 {strides = array<i32>} : memref<256x32xf32, #tpu.memory_space<vmem>>, vector<256x32xf32>,
    } else {
    }
    %c0 = arith.constant 0 : index
    %c0_1 = arith.constant 0 : index
    %3 = vector.load %arg6[%c0, %c0_1] : memref<256x32xf32, #tpu.memory_space<vmem>>, vector<256x32xf32>
    %c0_2 = arith.constant 0 : index
    %c0_3 = arith.constant 0 : index
    %4 = vector.load %arg2[%c0_2, %c0_3] : memref<256x256xf32, #tpu.memory_space<vmem>>, vector<256x256xf32>
    %c0_4 = arith.constant 0 : index
    %c0_5 = arith.constant 0 : index
    %5 = vector.load %arg3[%c0_4, %c0_5] : memref<256x32xf32, #tpu.memory_space<vmem>>, vector<256x32xf32>
    %cst = arith.constant dense<0.000000e+00> : vector<256x32xf32>
    %6 = tpu.matmul %4, %5, %cst {dimension_numbers = #tpu.dot_dimension_numbers<[1], [0], [0], [1], [0, 0, 1, 1], [], []>} : vector<256x256xf32>, vector<256x32xf32>, vector<256x32xf32> -> vector<256x32xf32>
    %7 = arith.addf %3, %6 : vector<256x32xf32>
    %c0_6 = arith.constant 0 : index
    %c0_7 = arith.constant 0 : index
    %8 = vector.load %arg6[%c0_6, %c0_7] : memref<256x32xf32, #tpu.memory_space<vmem>>, vector<256x32xf32>
    tpu.vector_store %arg6[%c0_6, %c0_7], %7 {strides = array<i32>} : memref<256x32xf32, #tpu.memory_space<vmem>>, vector<256x32xf32>,
    %c1_i32 = arith.constant 1 : i32
    %9 = arith.cmpi eq, %arg1, %c1_i32 : i32
    %10 = arith.extui %9 : i1 to i32
    %c0_i32_8 = arith.constant 0 : i32
    %11 = arith.cmpi ne, %10, %c0_i32_8 : i32
    scf.if %11 {
      %c0_9 = arith.constant 0 : index
      %c0_10 = arith.constant 0 : index
      %12 = vector.load %arg6[%c0_9, %c0_10] : memref<256x32xf32, #tpu.memory_space<vmem>>, vector<256x32xf32>
      %cst_11 = arith.constant 0.000000e+00 : f32
      %13 = vector.broadcast %cst_11 : f32 to vector<256x32xf32>
      %14 = arith.maximumf %12, %13 : vector<256x32xf32>
      %c0_12 = arith.constant 0 : index
      %c0_13 = arith.constant 0 : index
      %15 = vector.load %arg4[%c0_12, %c0_13] : memref<32x32xf32, #tpu.memory_space<vmem>>, vector<32x32xf32>
      %cst_14 = arith.constant dense<0.000000e+00> : vector<256x32xf32>
      %16 = tpu.matmul %14, %15, %cst_14 {dimension_numbers = #tpu.dot_dimension_numbers<[1], [0], [0], [1], [0, 0, 1, 1], [], []>} : vector<256x32xf32>, vector<32x32xf32>, vector<256x32xf32> -> vector<256x32xf32>
      %c0_15 = arith.constant 0 : index
      %c0_16 = arith.constant 0 : index
      %17 = vector.load %arg5[%c0_15, %c0_16] : memref<256x32xf32, #tpu.memory_space<vmem>>, vector<256x32xf32>
      tpu.vector_store %arg5[%c0_15, %c0_16], %16 {strides = array<i32>} : memref<256x32xf32, #tpu.memory_space<vmem>>, vector<256x32xf32>,
    } else {
    }
    return
  }
  func.func @transform_0(%arg0: i32, %arg1: i32) -> (i32, i32) {
    %c0_i32 = arith.constant 0 : i32
    return %arg0, %arg1 : i32, i32
  }
  func.func @transform_1(%arg0: i32, %arg1: i32) -> (i32, i32) {
    %c0_i32 = arith.constant 0 : i32
    %c0_i32_0 = arith.constant 0 : i32
    return %arg1, %c0_i32 : i32, i32
  }
  func.func @transform_2(%arg0: i32, %arg1: i32) -> (i32, i32) {
    %c0_i32 = arith.constant 0 : i32
    %c0_i32_0 = arith.constant 0 : i32
    %c0_i32_1 = arith.constant 0 : i32
    return %c0_i32, %c0_i32_0 : i32, i32
  }
  func.func @transform_3(%arg0: i32, %arg1: i32) -> (i32, i32) {
    %c0_i32 = arith.constant 0 : i32
    %c0_i32_0 = arith.constant 0 : i32
    return %arg0, %c0_i32 : i32, i32
  }
}

</mosaic_0001>

<bundles_post_ra>
// kernel: tpu_custom_call.1
= control target key start
LH: loop header
LB: loop body
LE: loop exit
PB: predicated region body
PF: predicated region fallthrough
CT: control target
= control target key end

     0   :  { %s2621_s0 = inlined_call_operand.hbm [shape: f32[512,512], index: 0, kind: input, shape index: {}]   ;;  %s2622_s1 = inlined_call_operand.hbm [shape: f32[512,32], index: 1, kind: input, shape index: {}]   ;;  %s2623_s2 = inlined_call_operand.hbm [shape: f32[32,32], index: 2, kind: input, shape index: {}]   ;;  %s2624_s3 = inlined_call_operand.hbm [shape: f32[512,32], index: 3, kind: output, shape index: {}]  }
   0x1   :  { %2647 = sst [smem:[#allocation24_spill]] %s2623_s2 }
   0x2   :  { %2648 = sst [smem:[#allocation25_spill]] %s2624_s3 }
   0x3   :  { %8 = vsyncpa [#allocation4], 0 }
   0x4   :  { %10 = vsyncpa [#allocation4 + $0x1], 0 }
   0x5   :  { %11 = vsyncpa [#allocation7], 0 }
   0x6   :  { %13 = vsyncpa [#allocation7 + $0x1], 0 }
   0x7   :  { %14 = vsyncpa [#allocation5], 0 }
   0x8   :  { %16 = vsyncpa [#allocation5 + $0x1], 0  ;;  %s1949_s12 = smov 0   ;;  %s1951_s13 = smov 0  }
   0x9   :  { %s1953_s14 = smov 0   ;;  %s1955_s15 = smov 0  }
   0xa   :  { %s1957_s16 = smov 0   ;;  %s1959_s17 = smov 0  }
   0xb   :  { %s1961_s18 = smov 0   ;;  %s1963_s19 = smov 0  }
   0xc   :  { %s1965_s20 = smov 0   ;;  %s1967_s21 = smov 0  }
   0xd   :  { %s1969_s22 = smov 0   ;;  %s1971_s23 = smov 0  }
   0xe   :  { %s1973_s24 = smov 0   ;;  %s1975_s25 = smov 0  }
   0xf LB: > { %2649 = sst [smem:[#allocation14_spill]] %s1862_s12  ;;  %s2016_s26 = sadd.s32 4294967295, %s1914_s25   ;;  %s1914_s25 = sphi %s1975_s25, %s22_s25   ;;  %s1910_s24 = sphi %s1973_s24, %s2709_s24   ;;  %s1906_s23 = sphi %s1971_s23, %s2708_s23   ;;  %s1902_s22 = sphi %s1969_s22, %s2707_s22   ;;  %s1898_s21 = sphi %s1967_s21, %s2706_s21   ;;  %s1894_s20 = sphi %s1965_s20, %s2705_s20   ;;  %s1890_s19 = sphi %s1963_s19, %s2704_s19   ;;  %s1886_s18 = sphi %s1961_s18, %s2703_s18   ;;  %s1882_s17 = sphi %s1959_s17, %s2702_s17   ;;  %s1878_s16 = sphi %s1957_s16, %s2701_s16   ;;  %s1874_s15 = sphi %s1955_s15, %s2700_s15   ;;  %s1870_s14 = sphi %s1953_s14, %s2699_s14   ;;  %s1866_s13 = sphi %s1951_s13, %s2698_s13   ;;  %s1862_s12 = sphi %s1949_s12, %s2697_s12  }
  0x10   : > { %2650 = sst [smem:[#allocation15_spill]] %s1866_s13  ;;  %s1278_s27 = sadd.s32 4294967294, %s1914_s25  }
  0x11   : > { %2651 = sst [smem:[#allocation16_spill]] %s1898_s21  ;;  %p56_p0 = scmp.ne.s32.totalorder %s1890_s19, %s1886_s18 }
  0x12   : > { %2652 = sst [smem:[#allocation17_spill]] %s1902_s22  ;;  %p2626_p1 = scmp.eq.s32.totalorder %s2016_s26, 0 }
  0x13   : > { %2653 = sst [smem:[#allocation18_spill]] %s2016_s26  ;;  %p82_p2 = scmp.ne.s32.totalorder %s1878_s16, %s1874_s15 }
  0x14   : > { %p2025_p3 = por %p2626_p1, %p56_p0  ;;  %p126_p4 = scmp.ne.s32.totalorder %s1870_s14, %s1866_s13 }
  0x15   : > { %p2033_p5 = por %p82_p2, %p2626_p1  ;;  %p127_p6 = scmp.eq.s32.totalorder %s2016_s26, 3 }
  0x16   : > { %s2654_s29 = scalar_select %p2025_p3, 1, 0 }
  0x17   : > { %s2655_s30 = scalar_select %p2033_p5, 1, 0 }
  0x18   : > { %p132_p7 = scmp.ne.s32.totalorder %s1866_s13, %s1862_s12  ;;  %p133_p8 = scmp.eq.s32.totalorder %s1278_s27, 3 }
  0x19   : > { %2656 = sst [smem:[#allocation19_spill]] %s2655_s30  ;;  %p2040_p9 = por %p127_p6, %p126_p4 }
  0x1a   : > { %p1279_p10 = scmp.ge.s32.totalorder %s1914_s25, 1  ;;  %p2045_p11 = por %p133_p8, %p132_p7 }
  0x1b   : > { %s2657_s4 = scalar_select %p2040_p9, 1, 0 }
  0x1c   : > { %s2659_s5 = scalar_select %p2045_p11, 1, 0 }
  0x1d   : > { %2658 = sst [smem:[#allocation20_spill]] %s2657_s4  ;;  %p140_p12 = scmp.lt.s32.totalorder %s1914_s25, 5 }
  0x1e   : > { %2660 = sst [smem:[#allocation21_spill]] %s2659_s5  ;;  %s1916_s7 = smov [#allocation8]  }
  0x1f   : > { %p2050_p13 = pnand %p1279_p10, %p140_p12  ;;  %s152_s8 = sshll.u32 %s1916_s7, 4  ;;  %s153_s8 = int_to_ptr.vmem [resolvable:$true] %s152_s8 }
  0x20   : > { %s2663_s2 = sld [smem:[#allocation24_spill]] }
  0x21   : > { %s2661_s6 = scalar_select %p2050_p13, 1, 0 }
  0x22   : > { %p1531_p0 = pneg %p2050_p13 }
  0x24   : > { %p2058_p2 = pnand %p1531_p0, %p2626_p1 }
  0x26   : > { %s1672_s15 = scalar_lea.hbm %s2663_s2, 512  ;;  %p1674_p6 = pneg %p2058_p2 }
  0x27   : > { %p1673_p4 = scmp.ne.s32.totalorder %s2663_s2, %s1672_s15  ;;  %p1679_p10 = scmp.lt.u32.totalorder %s1672_s15, %s2663_s2 }
  0x29   : > { %p1675_p7 = pnand %p1674_p6, %p1673_p4 }
  0x2b   : > { %p1676_p8 = pneg %p1675_p7 }
  0x2d   : > { %p1681_p12 = pnand %p1679_p10, %p1676_p8 }
  0x2f   : > { %1684 = shalt.err (!%p1681_p12)
}
  0x30   : > { %s1685_s5 = scalar_lea.vmem %s153_s8, 512  ;;  %p1693_p9 = scmp.lt.s32.totalorder %s153_s8, %s153_s8 }
  0x31   : > { %p1686_p0 = scmp.ne.s32.totalorder %s153_s8, %s1685_s5  ;;  %p1694_p5 = scmp.lt.s32.totalorder %s1685_s5, %s1685_s5 }
  0x33   : > { %p1688_p1 = pnand %p1686_p0, %p1674_p6  ;;  %p1695_p3 = por %p1694_p5, %p1693_p9 }
  0x35   : > { %p1689_p11 = pneg %p1688_p1 }
  0x37   : > { %p1696_p13 = pnand %p1695_p3, %p1689_p11 }
  0x39   : > { %1699 = shalt.err (!%p1696_p13)
}
  0x3a   : > { %s2631_s10 = smov 128   ;;  %s2632_s28 = smov 8  }
  0x3b   : > { %1534 = dma.hbm_to_vmem [thread:$0]  (!%p2058_p2), %s2663_s2, 512, %s153_s8, [#allocation7], %s2631_s10, %s2631_s10, %s2632_s28  }
  0x3c   : > { %s31_s15 = sadd.s32 1, %s1906_s23  ;;  %s34_s18 = sadd.s32 1, %s1910_s24 }
  0x3d   : > { %p32_p1 = scmp.ge.s32.totalorder %s31_s15, 2  ;;  %s43_s27 = sadd.s32 1, %s1894_s20 }
  0x3e   : > { %p50_p3 = scmp.ne.s32.totalorder %s1894_s20, %s1890_s19  ;;  %p2646_p5 = scmp.eq.s32.totalorder %s1914_s25, 0 }
  0x3f   : > { %s2711_s15 = smov (%p32_p1, %s31_s15), 0  ;;  %s2713_s18 = smov (!%p32_p1, %s34_s18), %s1910_s24 }
  0x40   : > { %2664 = sst [smem:[#allocation22_spill]] %s2711_s15  ;;  %s2091_s9 = ssub.s32 %s1906_s23, %s2711_s15 }
  0x41   : > { %p36_p9 = scmp.ge.s32.totalorder %s2713_s18, 2  ;;  %p67_p11 = scmp.eq.s32.totalorder %s2091_s9, 0 }
  0x42   : > { %p2097_p13 = por %p2646_p5, %p50_p3  ;;  %p2645_p2 = scmp.lt.s32.totalorder %s1914_s25, 4 }
  0x43   : > { %s2715_s18 = smov (%p36_p9, %s2713_s18), 0  ;;  %s166_s7 = sand.u32 1, %s1894_s20  }
  0x44   : > { %2666 = sst [smem:[#allocation23_spill]] %s2715_s18  ;;  %s1284_s5 = sshll.u32 %s1906_s23, 1 }
  0x45   : > { %s38_s11 = ssub.s32 %s1910_s24, %s2715_s18  ;;  %s1282_s28 = sshll.u32 %s166_s7, 9 }
  0x46   : > { %s40_s10 = sor.u32 %s2091_s9, %s38_s11  ;;  %p114_p4 = scmp.eq.s32.totalorder %s38_s11, 0 }
  0x47   : > { %p41_p6 = scmp.eq.s32.totalorder %s40_s10, 0  ;;  %s2667_s2 = sadd.s32 1, %s1870_s14 }
  0x48   : > { %s2112_s15 = scalar_select %p114_p4, %s1870_s14, %s2667_s2  }
  0x49   : > { %s2115_s12 = scalar_select %p41_p6, %s1894_s20, %s43_s27  }
  0x4a   : > { %s1334_s3 = sshll.u32 %s1910_s24, 7  ;;  %s170_s22 = scalar_lea.vmem [#allocation3], %s1282_s28 }
  0x4b   : > { %s177_s4 = sadd.s32 %s1334_s3, %s1284_s5  ;;  %s180_s21 = sshll.u32 %s170_s22, 4  ;;  %s2118_s21 = int_to_ptr.vmem [resolvable:$true] %s180_s21 }
  0x4c   : > { %s1286_s13 = sshll.u32 %s177_s4, 7  ;;  %p2129_p7 = pnand %p2645_p2, %p2097_p13 }
  0x4d   : > { %s2123_s18 = scalar_lea.hbm %s2621_s0, %s1286_s13  ;;  %s2133_s3 = scalar_lea.sflag [#allocation4], %s166_s7 }
  0x4e   : > { %s1700_s22 = scalar_lea.hbm %s2123_s18, 8192  ;;  %p1702_p10 = pneg %p2129_p7 }
  0x4f   : > { %p1701_p8 = scmp.ne.s32.totalorder %s2123_s18, %s1700_s22  ;;  %s1705_s30 = scalar_lea.hbm %s2621_s0, 32768 }
  0x50   : > { %p1706_p1 = scmp.lt.u32.totalorder %s2123_s18, %s2621_s0  ;;  %p1707_p3 = scmp.lt.u32.totalorder %s1705_s30, %s1700_s22 }
  0x51   : > { %p1703_p12 = pnand %p1702_p10, %p1701_p8  ;;  %p1709_p13 = scmp.lt.u32.totalorder %s1700_s22, %s2123_s18 }
  0x52   : > { %p1708_p9 = por %p1707_p3, %p1706_p1 }
  0x53   : > { %p1704_p0 = pneg %p1703_p12 }
  0x54   : > { %p1710_p4 = por %p1709_p13, %p1708_p9 }
  0x56   : > { %p1711_p6 = pnand %p1710_p4, %p1704_p0 }
  0x58   : > { %1714 = shalt.err (!%p1711_p6)
}
  0x59   : > { %s1715_s28 = scalar_lea.vmem %s2118_s21, 8192  ;;  %s1919_s27 = smov [#allocation3]  }
  0x5a   : > { %p1716_p8 = scmp.ne.s32.totalorder %s2118_s21, %s1715_s28  ;;  %s1720_s8 = sshll.u32 %s1919_s27, 4  ;;  %s1721_s8 = int_to_ptr.vmem [resolvable:$false] %s1720_s8 }
  0x5b   : > { %s1722_s7 = scalar_lea.vmem %s1721_s8, 16384  ;;  %p1723_p5 = scmp.lt.s32.totalorder %s2118_s21, %s1721_s8 }
  0x5c   : > { %p1718_p12 = pnand %p1716_p8, %p1702_p10  ;;  %p1724_p1 = scmp.lt.s32.totalorder %s1722_s7, %s1715_s28 }
  0x5e   : > { %p1719_p2 = pneg %p1718_p12  ;;  %p1725_p3 = por %p1724_p1, %p1723_p5 }
  0x60   : > { %p1726_p9 = pnand %p1725_p3, %p1719_p2 }
  0x62   : > { %1729 = shalt.err (!%p1726_p9)
}
  0x63   : > { %s1920_s5 = smov 512   ;;  %s1921_s11 = smov 256  }
  0x64   : > { %s1922_s22 = smov 16   ;;  %s190_s13 = sand.u32 1, %s1914_s25  }
  0x65   : > { %1538 = dma.hbm_to_vmem [thread:$0]  (!%p2129_p7), %s2123_s18, 8192, %s2118_s21, %s2133_s3, %s1920_s5, %s1921_s11, %s1922_s22  }
  0x66   : > { %s69_s26 = sadd.s32 1, %s1882_s17  ;;  %p76_p5 = scmp.ne.s32.totalorder %s1882_s17, %s1878_s16 }
  0x67   : > { %s2168_s30 = scalar_select %p67_p11, %s1882_s17, %s69_s26  }
  0x68   : > { %p2669_p2 = scmp.eq.s32.totalorder %s1914_s25, 0  ;;  %s192_s4 = sand.u32 1, %s1882_s17  }
  0x69   : > { %s1287_s10 = sshll.u32 %s192_s4, 8  ;;  %s1335_s28 = sshll.u32 %s1906_s23, 12 }
  0x6a   : > { %p78_p10 = por %p76_p5, %p2669_p2  ;;  %s2177_s7 = scalar_lea.hbm %s2622_s1, %s1335_s28 }
  0x6b   : > { %s194_s21 = scalar_lea.vmem [#allocation6], %s1287_s10  ;;  %p2670_p7 = scmp.lt.s32.totalorder %s1914_s25, 4 }
  0x6c   : > { %s201_s18 = sshll.u32 %s194_s21, 4  ;;  %s2187_s2 = scalar_lea.sflag [#allocation7], %s190_s13  ;;  %s2185_s18 = int_to_ptr.vmem [resolvable:$true] %s201_s18 }
  0x6d   : > { %p2181_p0 = pnand %p2670_p7, %p78_p10  ;;  %s1730_s3 = scalar_lea.hbm %s2177_s7, 4096 }
  0x6e   : > { %p1731_p11 = scmp.ne.s32.totalorder %s2177_s7, %s1730_s3  ;;  %s1735_s22 = scalar_lea.hbm %s2622_s1, 8192 }
  0x6f   : > { %p1732_p13 = pneg %p2181_p0  ;;  %p1736_p8 = scmp.lt.u32.totalorder %s2177_s7, %s2622_s1 }
  0x70   : > { %p1737_p12 = scmp.lt.u32.totalorder %s1735_s22, %s1730_s3  ;;  %p1739_p3 = scmp.lt.u32.totalorder %s1730_s3, %s2177_s7 }
  0x71   : > { %p1733_p4 = pnand %p1732_p13, %p1731_p11 }
  0x72   : > { %p1738_p1 = por %p1737_p12, %p1736_p8 }
  0x73   : > { %p1734_p6 = pneg %p1733_p4 }
  0x74   : > { %p1740_p9 = por %p1739_p3, %p1738_p1 }
  0x76   : > { %p1741_p5 = pnand %p1740_p9, %p1734_p6 }
  0x78   : > { %1744 = shalt.err (!%p1741_p5)
}
  0x79   : > { %s1745_s13 = scalar_lea.vmem %s2185_s18, 4096  ;;  %s1923_s10 = smov [#allocation6]  }
  0x7a   : > { %p1746_p2 = scmp.ne.s32.totalorder %s2185_s18, %s1745_s13  ;;  %s1750_s28 = sshll.u32 %s1923_s10, 4  ;;  %s1751_s28 = int_to_ptr.vmem [resolvable:$false] %s1750_s28 }
  0x7b   : > { %s1752_s27 = scalar_lea.vmem %s1751_s28, 8192  ;;  %p1753_p11 = scmp.lt.s32.totalorder %s2185_s18, %s1751_s28 }
  0x7c   : > { %p1748_p10 = pnand %p1746_p2, %p1732_p13  ;;  %p1754_p4 = scmp.lt.s32.totalorder %s1752_s27, %s1745_s13 }
  0x7e   : > { %p1749_p7 = pneg %p1748_p10  ;;  %p1755_p8 = por %p1754_p4, %p1753_p11 }
  0x80   : > { %p1756_p12 = pnand %p1755_p8, %p1749_p7 }
  0x82   : > { %1759 = shalt.err (!%p1756_p12)
}
  0x83   : > { %s2672_s8 = smov 8   ;;  %s2673_s21 = smov 128  }
  0x84   : > { %1541 = dma.hbm_to_vmem [thread:$0]  (!%p2181_p0), %s2177_s7, 4096, %s2185_s18, %s2187_s2, %s2673_s21, %s2673_s21, %s2672_s8  }
  0x85   : > { %p2674_p13 = scmp.ne.s32.totalorder %s2661_s6, 0 }
  0x86   : > { %s215_s3 = sand.u32 (!%p2674_p13), 1, %s1890_s19   ;;  %p2675_p6 = scmp.ne.s32.totalorder (!%p2674_p13), %s2654_s29, 0 }
  0x87   : > { %213 = sbr.rel (%p2674_p13) target bundleno = 772 (0x304), region = 32  ;;  %s1291_s5 = sshll.u32 (!%p2674_p13), %s215_s3, 9 }
  0x88   : > { %s216_s11 = scalar_lea.sflag (!%p2674_p13), [#allocation4], %s215_s3  ;;  %s2221_s22 = scalar_lea.vmem (!%p2674_p13), [#allocation3], %s1291_s5 }
  0x8e   : > { %1845 = dma.done.wait (%p2675_p6), %s216_s11, 8192  }
  0x8f   : > { %1847 = vsyncadd (%p2675_p6), %s216_s11, 4294959104  ;;  %s2676_s9 = sld [smem:[#allocation18_spill]]  ;;  %s2677_s26 = sld [smem:[#allocation19_spill]] }
  0x90   : > { %s226_s7 = sand.u32 1, %s1878_s16  }
  0x91   : > { %s1292_s18 = sshll.u32 %s226_s7, 8 }
  0x92   : > { %s2229_s2 = scalar_lea.vmem [#allocation6], %s1292_s18 }
  0x95   : > { %s224_s4 = sand.u32 1, %s2676_s9   ;;  %p2678_p0 = scmp.ne.s32.totalorder %s2677_s26, 0 }
  0x96   : > { %s225_s6 = scalar_lea.sflag [#allocation7], %s224_s4 }
  0x97   : > { %1849 = dma.done.wait (%p2678_p0), %s225_s6, 4096  }
  0x98   : > { %1851 = vsyncadd (%p2678_p0), %s225_s6, 4294963200  ;;  %p2679_p1 = scmp.eq.s32.totalorder %s2676_s9, 0 }
  0x9a   : > { %1853 = dma.done.wait (%p2679_p1), [#allocation7], 512   ;;  %p2680_p3 = pmov %p2679_p1 }
  0x9b   : > { %s2681_s29 = sld [smem:[#allocation15_spill]]  ;;  %s2682_s27 = sld [smem:[#allocation16_spill]] }
  0x9c   : > { %1855 = vsyncadd (%p2680_p3), [#allocation7], 4294966784 }
  0xa1   : > { %s257_s13 = sand.u32 1, %s2681_s29   ;;  %p1295_p9 = scmp.ne.s32.totalorder %s2682_s27, 0 }
  0xa2   : > { %s1294_s10 = sshll.u32 %s257_s13, 8  ;;  %vm268_vm0 = vcmask (!%p1295_p9), 261120   ;;  %v1924_v0 = vmov (!%p1295_p9), 0.0  }
  0xa3   : > { %s2242_s28 = scalar_lea.vmem [#allocation9], %s1294_s10  ;;  %267 = sbr.rel (%p1295_p9) target bundleno = 179 (0xb3), region = 48  ;;  %269 = vst.msk [vmem:[#allocation2] sm:$0xff] (!%p1295_p9), %vm268_vm0, %v1924_v0  ;;  %270 = vst.msk [vmem:[#allocation2 + $0x8] sm:$0xff] (!%p1295_p9), %vm268_vm0, %v1924_v0 }
  0xa4   : > { %271 = vst.msk [vmem:[#allocation2 + $0x10] sm:$0xff] (!%p1295_p9), %vm268_vm0, %v1924_v0  ;;  %272 = vst.msk [vmem:[#allocation2 + $0x18] sm:$0xff] (!%p1295_p9), %vm268_vm0, %v1924_v0 }
  0xa5   : > { %273 = vst.msk [vmem:[#allocation2 + $0x20] sm:$0xff] (!%p1295_p9), %vm268_vm0, %v1924_v0  ;;  %274 = vst.msk [vmem:[#allocation2 + $0x28] sm:$0xff] (!%p1295_p9), %vm268_vm0, %v1924_v0 }
  0xa6   : > { %275 = vst.msk [vmem:[#allocation2 + $0x30] sm:$0xff] (!%p1295_p9), %vm268_vm0, %v1924_v0  ;;  %276 = vst.msk [vmem:[#allocation2 + $0x38] sm:$0xff] (!%p1295_p9), %vm268_vm0, %v1924_v0 }
  0xa7   : > { %277 = vst.msk [vmem:[#allocation2 + $0x40] sm:$0xff] (!%p1295_p9), %vm268_vm0, %v1924_v0  ;;  %278 = vst.msk [vmem:[#allocation2 + $0x48] sm:$0xff] (!%p1295_p9), %vm268_vm0, %v1924_v0 }
  0xa8   : > { %279 = vst.msk [vmem:[#allocation2 + $0x50] sm:$0xff] (!%p1295_p9), %vm268_vm0, %v1924_v0  ;;  %280 = vst.msk [vmem:[#allocation2 + $0x58] sm:$0xff] (!%p1295_p9), %vm268_vm0, %v1924_v0 }
  0xa9   : > { %281 = vst.msk [vmem:[#allocation2 + $0x60] sm:$0xff] (!%p1295_p9), %vm268_vm0, %v1924_v0  ;;  %282 = vst.msk [vmem:[#allocation2 + $0x68] sm:$0xff] (!%p1295_p9), %vm268_vm0, %v1924_v0 }
  0xaa   : > { %283 = vst.msk [vmem:[#allocation2 + $0x70] sm:$0xff] %vm268_vm0, %v1924_v0  ;;  %284 = vst.msk [vmem:[#allocation2 + $0x78] sm:$0xff] %vm268_vm0, %v1924_v0 }
  0xab   : > { %285 = vst.msk [vmem:[#allocation2 + $0x80] sm:$0xff] %vm268_vm0, %v1924_v0  ;;  %286 = vst.msk [vmem:[#allocation2 + $0x88] sm:$0xff] %vm268_vm0, %v1924_v0 }
  0xac   : > { %287 = vst.msk [vmem:[#allocation2 + $0x90] sm:$0xff] %vm268_vm0, %v1924_v0  ;;  %288 = vst.msk [vmem:[#allocation2 + $0x98] sm:$0xff] %vm268_vm0, %v1924_v0 }
  0xad   : > { %289 = vst.msk [vmem:[#allocation2 + $0xa0] sm:$0xff] %vm268_vm0, %v1924_v0  ;;  %290 = vst.msk [vmem:[#allocation2 + $0xa8] sm:$0xff] %vm268_vm0, %v1924_v0 }
  0xae   : > { %291 = vst.msk [vmem:[#allocation2 + $0xb0] sm:$0xff] %vm268_vm0, %v1924_v0  ;;  %292 = vst.msk [vmem:[#allocation2 + $0xb8] sm:$0xff] %vm268_vm0, %v1924_v0 }
  0xaf   : > { %293 = vst.msk [vmem:[#allocation2 + $0xc0] sm:$0xff] %vm268_vm0, %v1924_v0  ;;  %294 = vst.msk [vmem:[#allocation2 + $0xc8] sm:$0xff] %vm268_vm0, %v1924_v0 }
  0xb0   : > { %295 = vst.msk [vmem:[#allocation2 + $0xd0] sm:$0xff] %vm268_vm0, %v1924_v0  ;;  %296 = vst.msk [vmem:[#allocation2 + $0xd8] sm:$0xff] %vm268_vm0, %v1924_v0 }
  0xb1   : > { %297 = vst.msk [vmem:[#allocation2 + $0xe0] sm:$0xff] %vm268_vm0, %v1924_v0  ;;  %298 = vst.msk [vmem:[#allocation2 + $0xe8] sm:$0xff] %vm268_vm0, %v1924_v0 }
  0xb2   : > { %299 = vst.msk [vmem:[#allocation2 + $0xf0] sm:$0xff] %vm268_vm0, %v1924_v0  ;;  %300 = vst.msk [vmem:[#allocation2 + $0xf8] sm:$0xff] %vm268_vm0, %v1924_v0 }
  0xb3 PF: > { %v397_v1 = vld [vmem:[%s2229_s2] sm:$0xff]  ;;  %v398_v2 = vld [vmem:[%s2229_s2 + $0x8] sm:$0xff]  ;;  %v399_v3 = vld [vmem:[%s2229_s2 + $0x10] sm:$0xff]  ;;  %v1925_v4 = vmov 0.0|0.0   ;;  %vm686_vm1 = vcmask 261120   ;;  %s2683_s8 = sld [smem:[#allocation16_spill]] }
  0xb4   : > { %1429 = vmatprep.subr.bf16.mxu0 %v1925_v4  ;;  %1485 = vmatprep.subr.bf16.mxu1 %v1925_v4  ;;  %v1430_v5 = vpack.c.bf16 %v398_v2, %v397_v1  ;;  %v400_v6 = vld [vmem:[%s2229_s2 + $0x18] sm:$0xff]  ;;  %v401_v8 = vld [vmem:[%s2229_s2 + $0x20] sm:$0xff]  ;;  %v402_v9 = vld [vmem:[%s2229_s2 + $0x28] sm:$0xff] }
  0xb5   : > { %v1433_v7 = vpack.c.bf16 %v400_v6, %v399_v3  ;;  %v1436_v10 = vpack.c.bf16 %v402_v9, %v401_v8  ;;  %v403_v11 = vld [vmem:[%s2229_s2 + $0x30] sm:$0xff]  ;;  %v404_v12 = vld [vmem:[%s2229_s2 + $0x38] sm:$0xff]  ;;  %v334_v13 = vld [vmem:[%s2221_s22 + $0x8] sm:$0xff] }
  0xb6   : > { %1431 = vmatpush1.bf16.msra.mxu0 %v1430_v5  ;;  %1501 = vmatpush1.bf16.msra.mxu1 %v1430_v5  ;;  %v1439_v14 = vpack.c.bf16 %v404_v12, %v403_v11  ;;  %v366_v15 = vld [vmem:[%s2221_s22 + $0x108] sm:$0xff]  ;;  %v405_v16 = vld [vmem:[%s2229_s2 + $0x40] sm:$0xff]  ;;  %v407_v19 = vld [vmem:[%s2229_s2 + $0x50] sm:$0xff] }
  0xb7   : > { %1432 = vmatprep.subr.bf16.mxu0 %v1925_v4  ;;  %1486 = vmatprep.subr.bf16.mxu1 %v1925_v4  ;;  %v406_v17 = vld [vmem:[%s2229_s2 + $0x48] sm:$0xff]  ;;  %v408_v20 = vld [vmem:[%s2229_s2 + $0x58] sm:$0xff]  ;;  %v409_v22 = vld [vmem:[%s2229_s2 + $0x60] sm:$0xff] }
  0xb8   : > { %493 = vmatprep.mubr.f32.mxu0 %v334_v13  ;;  %573 = vmatprep.mubr.f32.mxu1 %v366_v15  ;;  %v1442_v18 = vpack.c.bf16 %v406_v17, %v405_v16  ;;  %v1445_v21 = vpack.c.bf16 %v408_v20, %v407_v19  ;;  %v410_v23 = vld [vmem:[%s2229_s2 + $0x68] sm:$0xff]  ;;  %v411_v25 = vld [vmem:[%s2229_s2 + $0x70] sm:$0xff]  ;;  %v412_v26 = vld [vmem:[%s2229_s2 + $0x78] sm:$0xff] }
  0xb9   : > { %v1448_v24 = vpack.c.bf16 %v410_v23, %v409_v22  ;;  %v1451_v27 = vpack.c.bf16 %v412_v26, %v411_v25  ;;  %v413_v28 = vld [vmem:[%s2229_s2 + $0x80] sm:$0xff]  ;;  %v414_v29 = vld [vmem:[%s2229_s2 + $0x88] sm:$0xff]  ;;  %v415_v31 = vld [vmem:[%s2229_s2 + $0x90] sm:$0xff]  ;;  %p1296_p5 = scmp.ne.s32.totalorder %s2683_s8, 1 }
  0xba   : > { %1434 = vmatpush1.bf16.msra.mxu0 %v1433_v7  ;;  %1502 = vmatpush1.bf16.msra.mxu1 %v1433_v7  ;;  %v1454_v30 = vpack.c.bf16 %v414_v29, %v413_v28  ;;  %v416_v32 = vld [vmem:[%s2229_s2 + $0x98] sm:$0xff]  ;;  %v417_v34 = vld [vmem:[%s2229_s2 + $0xa0] sm:$0xff]  ;;  %v418_v35 = vld [vmem:[%s2229_s2 + $0xa8] sm:$0xff] }
  0xbb   : > { %1435 = vmatprep.subr.bf16.mxu0 %v1925_v4  ;;  %1487 = vmatprep.subr.bf16.mxu1 %v1925_v4  ;;  %v1457_v33 = vpack.c.bf16 %v416_v32, %v415_v31  ;;  %v1460_v36 = vpack.c.bf16 %v418_v35, %v417_v34  ;;  %v419_v37 = vld [vmem:[%s2229_s2 + $0xb0] sm:$0xff]  ;;  %v420_v38 = vld [vmem:[%s2229_s2 + $0xb8] sm:$0xff]  ;;  %v421_v40 = vld [vmem:[%s2229_s2 + $0xc0] sm:$0xff] }
  0xbc   : > { %v1463_v39 = vpack.c.bf16 %v420_v38, %v419_v37  ;;  %v422_v41 = vld [vmem:[%s2229_s2 + $0xc8] sm:$0xff]  ;;  %v423_v43 = vld [vmem:[%s2229_s2 + $0xd0] sm:$0xff]  ;;  %v424_v44 = vld [vmem:[%s2229_s2 + $0xd8] sm:$0xff] }
  0xbd   : > { %v1466_v42 = vpack.c.bf16 %v422_v41, %v421_v40  ;;  %v1469_v45 = vpack.c.bf16 %v424_v44, %v423_v43  ;;  %v425_v46 = vld [vmem:[%s2229_s2 + $0xe0] sm:$0xff]  ;;  %v426_v47 = vld [vmem:[%s2229_s2 + $0xe8] sm:$0xff]  ;;  %v427_v49 = vld [vmem:[%s2229_s2 + $0xf0] sm:$0xff] }
  0xbe   : > { %1437 = vmatpush1.bf16.msra.mxu0 %v1436_v10  ;;  %1503 = vmatpush1.bf16.msra.mxu1 %v1436_v10  ;;  %v1472_v48 = vpack.c.bf16 %v426_v47, %v425_v46  ;;  %v428_v50 = vld [vmem:[%s2229_s2 + $0xf8] sm:$0xff]  ;;  %v333_v52 = vld [vmem:[%s2221_s22] sm:$0xff]  ;;  %v335_v56 = vld [vmem:[%s2221_s22 + $0x10] sm:$0xff] }
  0xbf   : > { %1438 = vmatprep.subr.bf16.mxu0 %v1925_v4  ;;  %1488 = vmatprep.subr.bf16.mxu1 %v1925_v4  ;;  %v1475_v51 = vpack.c.bf16 %v428_v50, %v427_v49  ;;  %v365_v53 = vld [vmem:[%s2221_s22 + $0x100] sm:$0xff]  ;;  %v336_v54 = vld [vmem:[%s2221_s22 + $0x18] sm:$0xff]  ;;  %v367_v57 = vld [vmem:[%s2221_s22 + $0x110] sm:$0xff] }
  0xc0   : > { %v368_v55 = vld [vmem:[%s2221_s22 + $0x118] sm:$0xff]  ;;  %v338_v58 = vld [vmem:[%s2221_s22 + $0x28] sm:$0xff]  ;;  %v337_v60 = vld [vmem:[%s2221_s22 + $0x20] sm:$0xff] }
  0xc1   : > { %v370_v59 = vld [vmem:[%s2221_s22 + $0x128] sm:$0xff]  ;;  %v369_v61 = vld [vmem:[%s2221_s22 + $0x120] sm:$0xff]  ;;  %v340_v62 = vld [vmem:[%s2221_s22 + $0x38] sm:$0xff] }
  0xc2   : > { %1440 = vmatpush1.bf16.msra.mxu0 %v1439_v14  ;;  %1504 = vmatpush1.bf16.msra.mxu1 %v1439_v14  ;;  %v372_v63 = vld [vmem:[%s2221_s22 + $0x138] sm:$0xff]  ;;  %v339_v0 = vld [vmem:[%s2221_s22 + $0x30] sm:$0xff]  ;;  %v342_v2 = vld [vmem:[%s2221_s22 + $0x48] sm:$0xff] }
  0xc3   : > { %1441 = vmatprep.subr.bf16.mxu0 %v1925_v4  ;;  %1489 = vmatprep.subr.bf16.mxu1 %v1925_v4  ;;  %v371_v1 = vld [vmem:[%s2221_s22 + $0x130] sm:$0xff]  ;;  %v374_v3 = vld [vmem:[%s2221_s22 + $0x148] sm:$0xff]  ;;  %v373_v5 = vld [vmem:[%s2221_s22 + $0x140] sm:$0xff] }
  0xc4   : > { %v344_v6 = vld [vmem:[%s2221_s22 + $0x58] sm:$0xff]  ;;  %v343_v8 = vld [vmem:[%s2221_s22 + $0x50] sm:$0xff]  ;;  %v346_v10 = vld [vmem:[%s2221_s22 + $0x68] sm:$0xff] }
  0xc5   : > { %v376_v7 = vld [vmem:[%s2221_s22 + $0x158] sm:$0xff]  ;;  %v375_v9 = vld [vmem:[%s2221_s22 + $0x150] sm:$0xff]  ;;  %v378_v11 = vld [vmem:[%s2221_s22 + $0x168] sm:$0xff] }
  0xc6   : > { %1443 = vmatpush1.bf16.msra.mxu0 %v1442_v18  ;;  %1505 = vmatpush1.bf16.msra.mxu1 %v1442_v18  ;;  %v345_v12 = vld [vmem:[%s2221_s22 + $0x60] sm:$0xff]  ;;  %v348_v14 = vld [vmem:[%s2221_s22 + $0x78] sm:$0xff]  ;;  %v347_v16 = vld [vmem:[%s2221_s22 + $0x70] sm:$0xff] }
  0xc7   : > { %1444 = vmatprep.subr.bf16.mxu0 %v1925_v4  ;;  %1490 = vmatprep.subr.bf16.mxu1 %v1925_v4  ;;  %v377_v13 = vld [vmem:[%s2221_s22 + $0x160] sm:$0xff]  ;;  %v380_v15 = vld [vmem:[%s2221_s22 + $0x178] sm:$0xff]  ;;  %v379_v17 = vld [vmem:[%s2221_s22 + $0x170] sm:$0xff] }
  0xc8   : > { %v350_v18 = vld [vmem:[%s2221_s22 + $0x88] sm:$0xff]  ;;  %v349_v20 = vld [vmem:[%s2221_s22 + $0x80] sm:$0xff]  ;;  %v352_v22 = vld [vmem:[%s2221_s22 + $0x98] sm:$0xff] }
  0xc9   : > { %v382_v19 = vld [vmem:[%s2221_s22 + $0x188] sm:$0xff]  ;;  %v384_v23 = vld [vmem:[%s2221_s22 + $0x198] sm:$0xff]  ;;  %v383_v25 = vld [vmem:[%s2221_s22 + $0x190] sm:$0xff] }
  0xca   : > { %1446 = vmatpush1.bf16.msra.mxu0 %v1445_v21  ;;  %1506 = vmatpush1.bf16.msra.mxu1 %v1445_v21  ;;  %v381_v21 = vld [vmem:[%s2221_s22 + $0x180] sm:$0xff]  ;;  %v354_v26 = vld [vmem:[%s2221_s22 + $0xa8] sm:$0xff]  ;;  %v388_v31 = vld [vmem:[%s2221_s22 + $0x1b8] sm:$0xff] }
  0xcb   : > { %1447 = vmatprep.subr.bf16.mxu0 %v1925_v4  ;;  %1491 = vmatprep.subr.bf16.mxu1 %v1925_v4  ;;  %v353_v28 = vld [vmem:[%s2221_s22 + $0xa0] sm:$0xff]  ;;  %v355_v32 = vld [vmem:[%s2221_s22 + $0xb0] sm:$0xff]  ;;  %v358_v34 = vld [vmem:[%s2221_s22 + $0xc8] sm:$0xff] }
  0xcc   : > { %v385_v29 = vld [vmem:[%s2221_s22 + $0x1a0] sm:$0xff]  ;;  %v390_v35 = vld [vmem:[%s2221_s22 + $0x1c8] sm:$0xff]  ;;  %v360_v38 = vld [vmem:[%s2221_s22 + $0xd8] sm:$0xff] }
  0xcd   : > { %v389_v37 = vld [vmem:[%s2221_s22 + $0x1c0] sm:$0xff]  ;;  %v359_v40 = vld [vmem:[%s2221_s22 + $0xd0] sm:$0xff]  ;;  %v394_v43 = vld [vmem:[%s2221_s22 + $0x1e8] sm:$0xff] }
  0xce   : > { %1449 = vmatpush1.bf16.msra.mxu0 %v1448_v24  ;;  %1507 = vmatpush1.bf16.msra.mxu1 %v1448_v24  ;;  %v351_v24 = vld [vmem:[%s2221_s22 + $0x90] sm:$0xff]  ;;  %v361_v44 = vld [vmem:[%s2221_s22 + $0xe0] sm:$0xff]  ;;  %v364_v46 = vld [vmem:[%s2221_s22 + $0xf8] sm:$0xff] }
  0xcf   : > { %1450 = vmatprep.subr.bf16.mxu0 %v1925_v4  ;;  %1492 = vmatprep.subr.bf16.mxu1 %v1925_v4  ;;  %v391_v41 = vld [vmem:[%s2221_s22 + $0x1d0] sm:$0xff]  ;;  %v396_v47 = vld [vmem:[%s2221_s22 + $0x1f8] sm:$0xff]  ;;  %v301_v50 = vld [vmem:[#allocation2] sm:$0xff] }
  0xd0   : > { %v395_v49 = vld [vmem:[%s2221_s22 + $0x1f0] sm:$0xff] }
  0xd2   : > { %1452 = vmatpush1.bf16.msra.mxu0 %v1451_v27  ;;  %1508 = vmatpush1.bf16.msra.mxu1 %v1451_v27  ;;  %v386_v27 = vld [vmem:[%s2221_s22 + $0x1a8] sm:$0xff] }
  0xd3   : > { %1453 = vmatprep.subr.bf16.mxu0 %v1925_v4  ;;  %1493 = vmatprep.subr.bf16.mxu1 %v1925_v4 }
  0xd6   : > { %1455 = vmatpush1.bf16.msra.mxu0 %v1454_v30  ;;  %1509 = vmatpush1.bf16.msra.mxu1 %v1454_v30  ;;  %v356_v30 = vld [vmem:[%s2221_s22 + $0xb8] sm:$0xff] }
  0xd7   : > { %1456 = vmatprep.subr.bf16.mxu0 %v1925_v4  ;;  %1494 = vmatprep.subr.bf16.mxu1 %v1925_v4 }
  0xda   : > { %1458 = vmatpush1.bf16.msra.mxu0 %v1457_v33  ;;  %1510 = vmatpush1.bf16.msra.mxu1 %v1457_v33  ;;  %v387_v33 = vld [vmem:[%s2221_s22 + $0x1b0] sm:$0xff] }
  0xdb   : > { %1459 = vmatprep.subr.bf16.mxu0 %v1925_v4  ;;  %1495 = vmatprep.subr.bf16.mxu1 %v1925_v4 }
  0xde   : > { %1461 = vmatpush1.bf16.msra.mxu0 %v1460_v36  ;;  %1511 = vmatpush1.bf16.msra.mxu1 %v1460_v36  ;;  %v357_v36 = vld [vmem:[%s2221_s22 + $0xc0] sm:$0xff] }
  0xdf   : > { %1462 = vmatprep.subr.bf16.mxu0 %v1925_v4  ;;  %1496 = vmatprep.subr.bf16.mxu1 %v1925_v4 }
  0xe2   : > { %1464 = vmatpush1.bf16.msra.mxu0 %v1463_v39  ;;  %1512 = vmatpush1.bf16.msra.mxu1 %v1463_v39  ;;  %v392_v39 = vld [vmem:[%s2221_s22 + $0x1d8] sm:$0xff] }
  0xe3   : > { %1465 = vmatprep.subr.bf16.mxu0 %v1925_v4  ;;  %1497 = vmatprep.subr.bf16.mxu1 %v1925_v4 }
  0xe6   : > { %1467 = vmatpush1.bf16.msra.mxu0 %v1466_v42  ;;  %1513 = vmatpush1.bf16.msra.mxu1 %v1466_v42  ;;  %v362_v42 = vld [vmem:[%s2221_s22 + $0xe8] sm:$0xff] }
  0xe7   : > { %1468 = vmatprep.subr.bf16.mxu0 %v1925_v4  ;;  %1498 = vmatprep.subr.bf16.mxu1 %v1925_v4 }
  0xea   : > { %1470 = vmatpush1.bf16.msra.mxu0 %v1469_v45  ;;  %1514 = vmatpush1.bf16.msra.mxu1 %v1469_v45  ;;  %v393_v45 = vld [vmem:[%s2221_s22 + $0x1e0] sm:$0xff] }
  0xeb   : > { %1471 = vmatprep.subr.bf16.mxu0 %v1925_v4  ;;  %1499 = vmatprep.subr.bf16.mxu1 %v1925_v4 }
  0xee   : > { %1473 = vmatpush1.bf16.msra.mxu0 %v1472_v48  ;;  %1515 = vmatpush1.bf16.msra.mxu1 %v1472_v48  ;;  %v363_v48 = vld [vmem:[%s2221_s22 + $0xf0] sm:$0xff] }
  0xef   : > { %1474 = vmatprep.subr.bf16.mxu0 %v1925_v4  ;;  %1500 = vmatprep.subr.bf16.mxu1 %v1925_v4  ;;  %v341_v4 = vld [vmem:[%s2221_s22 + $0x40] sm:$0xff] }
  0xf2   : > { %1476 = vmatpush1.bf16.msra.mxu0 %v1475_v51  ;;  %1516 = vmatpush1.bf16.msra.mxu1 %v1475_v51  ;;  %v317_v51 = vld [vmem:[#allocation2 + $0x80] sm:$0xff] }
  0xf5   : > { %494 = vmatmul.mubr.f32.vlgmr.msra.gmra.mrb[0].mxu0 %v333_v52  ;;  %574 = vmatmul.mubr.f32.vlgmr.msra.gmra.mrb[0].mxu1 %v365_v53 }
  0xf6   : > { %498 = vmatprep.mubr.f32.mxu0 %v336_v54  ;;  %578 = vmatprep.mubr.f32.mxu1 %v368_v55 }
  0xf9   : > { %499 = vmatmul.mubr.f32.gmra.mrb[2].mxu0 %v335_v56  ;;  %579 = vmatmul.mubr.f32.gmra.mrb[2].mxu1 %v367_v57 }
  0xfa   : > { %503 = vmatprep.mubr.f32.mxu0 %v338_v58  ;;  %583 = vmatprep.mubr.f32.mxu1 %v370_v59  ;;  %v302_v58 = vld [vmem:[#allocation2 + $0x8] sm:$0xff] }
  0xfb   : > { %v318_v59 = vld [vmem:[#allocation2 + $0x88] sm:$0xff] }
  0xfd   : > { %504 = vmatmul.mubr.f32.gmra.mrb[4].mxu0 %v337_v60  ;;  %584 = vmatmul.mubr.f32.gmra.mrb[4].mxu1 %v369_v61 }
  0xfe   : > { %508 = vmatprep.mubr.f32.mxu0 %v340_v62  ;;  %588 = vmatprep.mubr.f32.mxu1 %v372_v63 }
 0x101   : > { %509 = vmatmul.mubr.f32.gmra.mrb[6].mxu0 %v339_v0  ;;  %589 = vmatmul.mubr.f32.gmra.mrb[6].mxu1 %v371_v1 }
 0x102   : > { %513 = vmatprep.mubr.f32.mxu0 %v342_v2  ;;  %593 = vmatprep.mubr.f32.mxu1 %v374_v3  ;;  %v303_v2 = vld [vmem:[#allocation2 + $0x10] sm:$0xff] }
 0x103   : > { %v319_v3 = vld [vmem:[#allocation2 + $0x90] sm:$0xff] }
 0x105   : > { %514 = vmatmul.mubr.f32.gmra.mrb[8].mxu0 %v341_v4  ;;  %594 = vmatmul.mubr.f32.gmra.mrb[8].mxu1 %v373_v5 }
 0x106   : > { %518 = vmatprep.mubr.f32.mxu0 %v344_v6  ;;  %598 = vmatprep.mubr.f32.mxu1 %v376_v7 }
 0x109   : > { %519 = vmatmul.mubr.f32.gmra.mrb[10].mxu0 %v343_v8  ;;  %599 = vmatmul.mubr.f32.gmra.mrb[10].mxu1 %v375_v9 }
 0x10a   : > { %523 = vmatprep.mubr.f32.mxu0 %v346_v10  ;;  %603 = vmatprep.mubr.f32.mxu1 %v378_v11  ;;  %v304_v10 = vld [vmem:[#allocation2 + $0x18] sm:$0xff] }
 0x10b   : > { %v320_v11 = vld [vmem:[#allocation2 + $0x98] sm:$0xff] }
 0x10d   : > { %524 = vmatmul.mubr.f32.gmra.mrb[12].mxu0 %v345_v12  ;;  %604 = vmatmul.mubr.f32.gmra.mrb[12].mxu1 %v377_v13 }
 0x10e   : > { %528 = vmatprep.mubr.f32.mxu0 %v348_v14  ;;  %608 = vmatprep.mubr.f32.mxu1 %v380_v15 }
 0x111   : > { %529 = vmatmul.mubr.f32.gmra.mrb[14].mxu0 %v347_v16  ;;  %609 = vmatmul.mubr.f32.gmra.mrb[14].mxu1 %v379_v17 }
 0x112   : > { %533 = vmatprep.mubr.f32.mxu0 %v350_v18  ;;  %613 = vmatprep.mubr.f32.mxu1 %v382_v19  ;;  %v305_v18 = vld [vmem:[#allocation2 + $0x20] sm:$0xff] }
 0x113   : > { %v321_v19 = vld [vmem:[#allocation2 + $0xa0] sm:$0xff] }
 0x115   : > { %534 = vmatmul.mubr.f32.gmra.mrb[16].mxu0 %v349_v20  ;;  %614 = vmatmul.mubr.f32.gmra.mrb[16].mxu1 %v381_v21 }
 0x116   : > { %538 = vmatprep.mubr.f32.mxu0 %v352_v22  ;;  %618 = vmatprep.mubr.f32.mxu1 %v384_v23 }
 0x119   : > { %539 = vmatmul.mubr.f32.gmra.mrb[18].mxu0 %v351_v24  ;;  %619 = vmatmul.mubr.f32.gmra.mrb[18].mxu1 %v383_v25 }
 0x11a   : > { %543 = vmatprep.mubr.f32.mxu0 %v354_v26  ;;  %623 = vmatprep.mubr.f32.mxu1 %v386_v27  ;;  %v306_v26 = vld [vmem:[#allocation2 + $0x28] sm:$0xff] }
 0x11b   : > { %v322_v27 = vld [vmem:[#allocation2 + $0xa8] sm:$0xff] }
 0x11d   : > { %544 = vmatmul.mubr.f32.gmra.mrb[20].mxu0 %v353_v28  ;;  %624 = vmatmul.mubr.f32.gmra.mrb[20].mxu1 %v385_v29 }
 0x11e   : > { %548 = vmatprep.mubr.f32.mxu0 %v356_v30  ;;  %628 = vmatprep.mubr.f32.mxu1 %v388_v31 }
 0x121   : > { %549 = vmatmul.mubr.f32.gmra.mrb[22].mxu0 %v355_v32  ;;  %629 = vmatmul.mubr.f32.gmra.mrb[22].mxu1 %v387_v33 }
 0x122   : > { %553 = vmatprep.mubr.f32.mxu0 %v358_v34  ;;  %633 = vmatprep.mubr.f32.mxu1 %v390_v35  ;;  %v307_v34 = vld [vmem:[#allocation2 + $0x30] sm:$0xff] }
 0x123   : > { %v323_v35 = vld [vmem:[#allocation2 + $0xb0] sm:$0xff] }
 0x125   : > { %554 = vmatmul.mubr.f32.gmra.mrb[24].mxu0 %v357_v36  ;;  %634 = vmatmul.mubr.f32.gmra.mrb[24].mxu1 %v389_v37 }
 0x126   : > { %558 = vmatprep.mubr.f32.mxu0 %v360_v38  ;;  %638 = vmatprep.mubr.f32.mxu1 %v392_v39 }
 0x129   : > { %559 = vmatmul.mubr.f32.gmra.mrb[26].mxu0 %v359_v40  ;;  %639 = vmatmul.mubr.f32.gmra.mrb[26].mxu1 %v391_v41 }
 0x12a   : > { %563 = vmatprep.mubr.f32.mxu0 %v362_v42  ;;  %643 = vmatprep.mubr.f32.mxu1 %v394_v43  ;;  %v308_v42 = vld [vmem:[#allocation2 + $0x38] sm:$0xff] }
 0x12b   : > { %v324_v43 = vld [vmem:[#allocation2 + $0xb8] sm:$0xff] }
 0x12d   : > { %564 = vmatmul.mubr.f32.gmra.mrb[28].mxu0 %v361_v44  ;;  %644 = vmatmul.mubr.f32.gmra.mrb[28].mxu1 %v393_v45 }
 0x12e   : > { %568 = vmatprep.mubr.f32.mxu0 %v364_v46  ;;  %648 = vmatprep.mubr.f32.mxu1 %v396_v47 }
 0x131   : > { %569 = vmatmul.mubr.f32.gmra.mrb[30].mxu0 %v363_v48  ;;  %649 = vmatmul.mubr.f32.gmra.mrb[30].mxu1 %v395_v49 }
 0x1c8   : > { %v495_v52 = vpop.f32.mrb[0].mxu0  ;;  %v575_v53 = vpop.f32.mrb[0].mxu1 }
 0x1c9   : > { %v654_v54 = vadd.f32 %v495_v52, %v301_v50  ;;  %v670_v55 = vadd.f32 %v575_v53, %v317_v51  ;;  %v497_v56 = vpop.f32.mrb[1].mxu0  ;;  %v577_v57 = vpop.f32.mrb[1].mxu1  ;;  %v309_v50 = vld [vmem:[#allocation2 + $0x40] sm:$0xff] }
 0x1ca   : > { %v325_v51 = vld [vmem:[#allocation2 + $0xc0] sm:$0xff] }
 0x1cb   : > { %687 = vst.msk [vmem:[#allocation2] sm:$0xff] %vm686_vm1, %v654_v54  ;;  %703 = vst.msk [vmem:[#allocation2 + $0x80] sm:$0xff] %vm686_vm1, %v670_v55 }
 0x1cc   : > { %v500_v60 = vpop.f32.mrb[2].mxu0  ;;  %v580_v61 = vpop.f32.mrb[2].mxu1 }
 0x1cd   : > { %v655_v62 = vadd.f32 %v500_v60, %v302_v58  ;;  %v671_v63 = vadd.f32 %v580_v61, %v318_v59  ;;  %v502_v0 = vpop.f32.mrb[3].mxu0  ;;  %v582_v1 = vpop.f32.mrb[3].mxu1  ;;  %v310_v58 = vld [vmem:[#allocation2 + $0x48] sm:$0xff] }
 0x1ce   : > { %v326_v59 = vld [vmem:[#allocation2 + $0xc8] sm:$0xff] }
 0x1cf   : > { %688 = vst.msk [vmem:[#allocation2 + $0x8] sm:$0xff] %vm686_vm1, %v655_v62  ;;  %704 = vst.msk [vmem:[#allocation2 + $0x88] sm:$0xff] %vm686_vm1, %v671_v63 }
 0x1d0   : > { %v505_v4 = vpop.f32.mrb[4].mxu0  ;;  %v585_v5 = vpop.f32.mrb[4].mxu1 }
 0x1d1   : > { %v656_v6 = vadd.f32 %v505_v4, %v303_v2  ;;  %v672_v7 = vadd.f32 %v585_v5, %v319_v3  ;;  %v507_v8 = vpop.f32.mrb[5].mxu0  ;;  %v587_v9 = vpop.f32.mrb[5].mxu1  ;;  %v311_v2 = vld [vmem:[#allocation2 + $0x50] sm:$0xff] }
 0x1d2   : > { %v327_v3 = vld [vmem:[#allocation2 + $0xd0] sm:$0xff] }
 0x1d3   : > { %689 = vst.msk [vmem:[#allocation2 + $0x10] sm:$0xff] %vm686_vm1, %v656_v6  ;;  %705 = vst.msk [vmem:[#allocation2 + $0x90] sm:$0xff] %vm686_vm1, %v672_v7 }
 0x1d4   : > { %v510_v12 = vpop.f32.mrb[6].mxu0  ;;  %v590_v13 = vpop.f32.mrb[6].mxu1 }
 0x1d5   : > { %v657_v14 = vadd.f32 %v510_v12, %v304_v10  ;;  %v673_v15 = vadd.f32 %v590_v13, %v320_v11  ;;  %v512_v16 = vpop.f32.mrb[7].mxu0  ;;  %v592_v17 = vpop.f32.mrb[7].mxu1  ;;  %v312_v10 = vld [vmem:[#allocation2 + $0x58] sm:$0xff] }
 0x1d6   : > { %v328_v11 = vld [vmem:[#allocation2 + $0xd8] sm:$0xff] }
 0x1d7   : > { %690 = vst.msk [vmem:[#allocation2 + $0x18] sm:$0xff] %vm686_vm1, %v657_v14  ;;  %706 = vst.msk [vmem:[#allocation2 + $0x98] sm:$0xff] %vm686_vm1, %v673_v15 }
 0x1d8   : > { %v515_v20 = vpop.f32.mrb[8].mxu0  ;;  %v595_v21 = vpop.f32.mrb[8].mxu1 }
 0x1d9   : > { %v658_v22 = vadd.f32 %v515_v20, %v305_v18  ;;  %v674_v23 = vadd.f32 %v595_v21, %v321_v19  ;;  %v517_v24 = vpop.f32.mrb[9].mxu0  ;;  %v597_v25 = vpop.f32.mrb[9].mxu1  ;;  %v313_v18 = vld [vmem:[#allocation2 + $0x60] sm:$0xff] }
 0x1da   : > { %v329_v19 = vld [vmem:[#allocation2 + $0xe0] sm:$0xff] }
 0x1db   : > { %691 = vst.msk [vmem:[#allocation2 + $0x20] sm:$0xff] %vm686_vm1, %v658_v22  ;;  %707 = vst.msk [vmem:[#allocation2 + $0xa0] sm:$0xff] %vm686_vm1, %v674_v23 }
 0x1dc   : > { %v520_v28 = vpop.f32.mrb[10].mxu0  ;;  %v600_v29 = vpop.f32.mrb[10].mxu1 }
 0x1dd   : > { %v659_v30 = vadd.f32 %v520_v28, %v306_v26  ;;  %v675_v31 = vadd.f32 %v600_v29, %v322_v27  ;;  %v522_v32 = vpop.f32.mrb[11].mxu0  ;;  %v602_v33 = vpop.f32.mrb[11].mxu1  ;;  %v314_v26 = vld [vmem:[#allocation2 + $0x68] sm:$0xff] }
 0x1de   : > { %v330_v27 = vld [vmem:[#allocation2 + $0xe8] sm:$0xff] }
 0x1df   : > { %692 = vst.msk [vmem:[#allocation2 + $0x28] sm:$0xff] %vm686_vm1, %v659_v30  ;;  %708 = vst.msk [vmem:[#allocation2 + $0xa8] sm:$0xff] %vm686_vm1, %v675_v31 }
 0x1e0   : > { %v525_v36 = vpop.f32.mrb[12].mxu0  ;;  %v605_v37 = vpop.f32.mrb[12].mxu1 }
 0x1e1   : > { %v660_v38 = vadd.f32 %v525_v36, %v307_v34  ;;  %v676_v39 = vadd.f32 %v605_v37, %v323_v35  ;;  %v527_v40 = vpop.f32.mrb[13].mxu0  ;;  %v607_v41 = vpop.f32.mrb[13].mxu1  ;;  %v315_v34 = vld [vmem:[#allocation2 + $0x70] sm:$0xff] }
 0x1e2   : > { %v331_v35 = vld [vmem:[#allocation2 + $0xf0] sm:$0xff] }
 0x1e3   : > { %693 = vst.msk [vmem:[#allocation2 + $0x30] sm:$0xff] %vm686_vm1, %v660_v38  ;;  %709 = vst.msk [vmem:[#allocation2 + $0xb0] sm:$0xff] %vm686_vm1, %v676_v39 }
 0x1e4   : > { %v530_v44 = vpop.f32.mrb[14].mxu0  ;;  %v610_v45 = vpop.f32.mrb[14].mxu1 }
 0x1e5   : > { %v661_v46 = vadd.f32 %v530_v44, %v308_v42  ;;  %v677_v47 = vadd.f32 %v610_v45, %v324_v43  ;;  %v532_v48 = vpop.f32.mrb[15].mxu0  ;;  %v612_v49 = vpop.f32.mrb[15].mxu1  ;;  %v316_v42 = vld [vmem:[#allocation2 + $0x78] sm:$0xff] }
 0x1e6   : > { %v332_v43 = vld [vmem:[#allocation2 + $0xf8] sm:$0xff] }
 0x1e7   : > { %694 = vst.msk [vmem:[#allocation2 + $0x38] sm:$0xff] %vm686_vm1, %v661_v46  ;;  %710 = vst.msk [vmem:[#allocation2 + $0xb8] sm:$0xff] %vm686_vm1, %v677_v47 }
 0x1e8   : > { %v535_v52 = vpop.f32.mrb[16].mxu0  ;;  %v615_v53 = vpop.f32.mrb[16].mxu1 }
 0x1e9   : > { %v662_v54 = vadd.f32 %v535_v52, %v309_v50  ;;  %v678_v55 = vadd.f32 %v615_v53, %v325_v51  ;;  %v537_v56 = vpop.f32.mrb[17].mxu0  ;;  %v617_v57 = vpop.f32.mrb[17].mxu1  ;;  %v787_v50 = vld [vmem:[#allocation8] sm:$0xff] (!%p1296_p5)  ;;  %v788_v51 = vld [vmem:[#allocation8 + $0x8] sm:$0xff] (!%p1296_p5)  ;;  %v789_v52 = vld [vmem:[#allocation8 + $0x10] sm:$0xff] (!%p1296_p5) }
 0x1ea   : > { %v1477_v53 = vpack.c.bf16 (!%p1296_p5), %v788_v51, %v787_v50  ;;  %v739_v56 = vld [vmem:[#allocation2 + $0x80] sm:$0xff] (!%p1296_p5) }
 0x1eb   : > { %695 = vst.msk [vmem:[#allocation2 + $0x40] sm:$0xff] %vm686_vm1, %v662_v54  ;;  %711 = vst.msk [vmem:[#allocation2 + $0xc0] sm:$0xff] %vm686_vm1, %v678_v55  ;;  %v790_v54 = vld [vmem:[#allocation8 + $0x18] sm:$0xff] (!%p1296_p5)  ;;  %v723_v55 = vld [vmem:[#allocation2] sm:$0xff] (!%p1296_p5) }
 0x1ec   : > { %v540_v60 = vpop.f32.mrb[18].mxu0  ;;  %v620_v61 = vpop.f32.mrb[18].mxu1  ;;  %v1481_v57 = vpack.c.bf16 (!%p1296_p5), %v790_v54, %v789_v52  ;;  %1478 = vmatprep.subr.bf16.mxu0 (!%p1296_p5), %v1477_v53  ;;  %1517 = vmatprep.subr.bf16.mxu1 (!%p1296_p5), %v1477_v53 }
 0x1ed   : > { %v663_v62 = vadd.f32 %v540_v60, %v310_v58  ;;  %v679_v63 = vadd.f32 %v620_v61, %v326_v59  ;;  %v542_v0 = vpop.f32.mrb[19].mxu0  ;;  %v622_v1 = vpop.f32.mrb[19].mxu1  ;;  %v755_v58 = vmax.f32 (!%p1296_p5), %v723_v55, 0.0  ;;  %v771_v59 = vmax.f32 (!%p1296_p5), %v739_v56, 0.0  ;;  %1480 = vmatpush3.bf16.msra.mxu0 (!%p1296_p5), %v1477_v53  ;;  %1519 = vmatpush3.bf16.msra.mxu1 (!%p1296_p5), %v1477_v53  ;;  %v724_v60 = vld [vmem:[#allocation2 + $0x8] sm:$0xff] (!%p1296_p5) }
 0x1ee   : > { %v740_v61 = vld [vmem:[#allocation2 + $0x88] sm:$0xff] (!%p1296_p5)  ;;  %1482 = vmatprep.subr.bf16.mxu0 (!%p1296_p5), %v1481_v57  ;;  %1518 = vmatprep.subr.bf16.mxu1 (!%p1296_p5), %v1481_v57  ;;  %v756_v0 = vmax.f32 (!%p1296_p5), %v724_v60, 0.0 }
 0x1ef   : > { %696 = vst.msk [vmem:[#allocation2 + $0x48] sm:$0xff] %vm686_vm1, %v663_v62  ;;  %712 = vst.msk [vmem:[#allocation2 + $0xc8] sm:$0xff] %vm686_vm1, %v679_v63  ;;  %v725_v62 = vld [vmem:[#allocation2 + $0x10] sm:$0xff] (!%p1296_p5)  ;;  %1381 = vmatprep.mubr.msk.f32.mxu0 (!%p1296_p5), %vm686_vm1, %v755_v58  ;;  %1405 = vmatprep.mubr.msk.f32.mxu1 (!%p1296_p5), %vm686_vm1, %v771_v59  ;;  %v772_v1 = vmax.f32 (!%p1296_p5), %v740_v61, 0.0 }
 0x1f0   : > { %v545_v4 = vpop.f32.mrb[20].mxu0  ;;  %v625_v5 = vpop.f32.mrb[20].mxu1  ;;  %v741_v63 = vld [vmem:[#allocation2 + $0x90] sm:$0xff] (!%p1296_p5) }
 0x1f1   : > { %v664_v6 = vadd.f32 %v545_v4, %v311_v2  ;;  %v680_v7 = vadd.f32 %v625_v5, %v327_v3  ;;  %v547_v8 = vpop.f32.mrb[21].mxu0  ;;  %v627_v9 = vpop.f32.mrb[21].mxu1  ;;  %1484 = vmatpush3.bf16.msra.mxu0 (!%p1296_p5), %v1481_v57  ;;  %1520 = vmatpush3.bf16.msra.mxu1 (!%p1296_p5), %v1481_v57  ;;  %v757_v2 = vmax.f32 (!%p1296_p5), %v725_v62, 0.0  ;;  %v773_v3 = vmax.f32 (!%p1296_p5), %v741_v63, 0.0  ;;  %v726_v4 = vld [vmem:[#allocation2 + $0x18] sm:$0xff] (!%p1296_p5) }
 0x1f2   : > { %v742_v5 = vld [vmem:[#allocation2 + $0x98] sm:$0xff] (!%p1296_p5)  ;;  %v758_v8 = vmax.f32 (!%p1296_p5), %v726_v4, 0.0 }
 0x1f3   : > { %697 = vst.msk [vmem:[#allocation2 + $0x50] sm:$0xff] %vm686_vm1, %v664_v6  ;;  %713 = vst.msk [vmem:[#allocation2 + $0xd0] sm:$0xff] %vm686_vm1, %v680_v7  ;;  %v727_v6 = vld [vmem:[#allocation2 + $0x20] sm:$0xff] (!%p1296_p5)  ;;  %v774_v9 = vmax.f32 (!%p1296_p5), %v742_v5, 0.0 }
 0x1f4   : > { %v550_v12 = vpop.f32.mrb[22].mxu0  ;;  %v630_v13 = vpop.f32.mrb[22].mxu1  ;;  %v743_v7 = vld [vmem:[#allocation2 + $0xa0] sm:$0xff] (!%p1296_p5)  ;;  %1382 = vmatmul.mubr.msk.f32.vlgmr.msra.gmra.mrb[0].mxu0 (!%p1296_p5), %vm686_vm1, %v756_v0  ;;  %1406 = vmatmul.mubr.msk.f32.vlgmr.msra.gmra.mrb[0].mxu1 (!%p1296_p5), %vm686_vm1, %v772_v1 }
 0x1f5   : > { %v665_v14 = vadd.f32 %v550_v12, %v312_v10  ;;  %v681_v15 = vadd.f32 %v630_v13, %v328_v11  ;;  %v552_v16 = vpop.f32.mrb[23].mxu0  ;;  %v632_v17 = vpop.f32.mrb[23].mxu1  ;;  %1384 = vmatprep.mubr.msk.f32.mxu0 (!%p1296_p5), %vm686_vm1, %v757_v2  ;;  %1408 = vmatprep.mubr.msk.f32.mxu1 (!%p1296_p5), %vm686_vm1, %v773_v3  ;;  %v759_v10 = vmax.f32 (!%p1296_p5), %v727_v6, 0.0  ;;  %v775_v11 = vmax.f32 (!%p1296_p5), %v743_v7, 0.0  ;;  %v728_v12 = vld [vmem:[#allocation2 + $0x28] sm:$0xff] (!%p1296_p5) }
 0x1f6   : > { %v744_v13 = vld [vmem:[#allocation2 + $0xa8] sm:$0xff] (!%p1296_p5)  ;;  %v760_v16 = vmax.f32 (!%p1296_p5), %v728_v12, 0.0 }
 0x1f7   : > { %698 = vst.msk [vmem:[#allocation2 + $0x58] sm:$0xff] %vm686_vm1, %v665_v14  ;;  %714 = vst.msk [vmem:[#allocation2 + $0xd8] sm:$0xff] %vm686_vm1, %v681_v15  ;;  %v729_v14 = vld [vmem:[#allocation2 + $0x30] sm:$0xff] (!%p1296_p5)  ;;  %v776_v17 = vmax.f32 (!%p1296_p5), %v744_v13, 0.0 }
 0x1f8   : > { %v555_v20 = vpop.f32.mrb[24].mxu0  ;;  %v635_v21 = vpop.f32.mrb[24].mxu1  ;;  %v745_v15 = vld [vmem:[#allocation2 + $0xb0] sm:$0xff] (!%p1296_p5)  ;;  %1385 = vmatmul.mubr.msk.f32.gmra.mrb[2].mxu0 (!%p1296_p5), %vm686_vm1, %v758_v8  ;;  %1409 = vmatmul.mubr.msk.f32.gmra.mrb[2].mxu1 (!%p1296_p5), %vm686_vm1, %v774_v9 }
 0x1f9   : > { %v666_v22 = vadd.f32 %v555_v20, %v313_v18  ;;  %v682_v23 = vadd.f32 %v635_v21, %v329_v19  ;;  %v557_v24 = vpop.f32.mrb[25].mxu0  ;;  %v637_v25 = vpop.f32.mrb[25].mxu1  ;;  %1387 = vmatprep.mubr.msk.f32.mxu0 (!%p1296_p5), %vm686_vm1, %v759_v10  ;;  %1411 = vmatprep.mubr.msk.f32.mxu1 (!%p1296_p5), %vm686_vm1, %v775_v11  ;;  %v761_v18 = vmax.f32 (!%p1296_p5), %v729_v14, 0.0  ;;  %v777_v19 = vmax.f32 (!%p1296_p5), %v745_v15, 0.0  ;;  %v730_v20 = vld [vmem:[#allocation2 + $0x38] sm:$0xff] (!%p1296_p5) }
 0x1fa   : > { %v746_v21 = vld [vmem:[#allocation2 + $0xb8] sm:$0xff] (!%p1296_p5)  ;;  %v762_v24 = vmax.f32 (!%p1296_p5), %v730_v20, 0.0 }
 0x1fb   : > { %699 = vst.msk [vmem:[#allocation2 + $0x60] sm:$0xff] %vm686_vm1, %v666_v22  ;;  %715 = vst.msk [vmem:[#allocation2 + $0xe0] sm:$0xff] %vm686_vm1, %v682_v23  ;;  %v731_v22 = vld [vmem:[#allocation2 + $0x40] sm:$0xff] (!%p1296_p5)  ;;  %v778_v25 = vmax.f32 (!%p1296_p5), %v746_v21, 0.0 }
 0x1fc   : > { %v560_v28 = vpop.f32.mrb[26].mxu0  ;;  %v640_v29 = vpop.f32.mrb[26].mxu1  ;;  %v747_v23 = vld [vmem:[#allocation2 + $0xc0] sm:$0xff] (!%p1296_p5)  ;;  %1388 = vmatmul.mubr.msk.f32.gmra.mrb[4].mxu0 (!%p1296_p5), %vm686_vm1, %v760_v16  ;;  %1412 = vmatmul.mubr.msk.f32.gmra.mrb[4].mxu1 (!%p1296_p5), %vm686_vm1, %v776_v17 }
 0x1fd   : > { %v667_v30 = vadd.f32 %v560_v28, %v314_v26  ;;  %v683_v31 = vadd.f32 %v640_v29, %v330_v27  ;;  %v562_v32 = vpop.f32.mrb[27].mxu0  ;;  %v642_v33 = vpop.f32.mrb[27].mxu1  ;;  %1390 = vmatprep.mubr.msk.f32.mxu0 (!%p1296_p5), %vm686_vm1, %v761_v18  ;;  %1414 = vmatprep.mubr.msk.f32.mxu1 (!%p1296_p5), %vm686_vm1, %v777_v19  ;;  %v763_v26 = vmax.f32 (!%p1296_p5), %v731_v22, 0.0  ;;  %v779_v27 = vmax.f32 (!%p1296_p5), %v747_v23, 0.0  ;;  %v732_v28 = vld [vmem:[#allocation2 + $0x48] sm:$0xff] (!%p1296_p5) }
 0x1fe   : > { %v748_v29 = vld [vmem:[#allocation2 + $0xc8] sm:$0xff] (!%p1296_p5)  ;;  %v764_v32 = vmax.f32 (!%p1296_p5), %v732_v28, 0.0 }
 0x1ff   : > { %700 = vst.msk [vmem:[#allocation2 + $0x68] sm:$0xff] %vm686_vm1, %v667_v30  ;;  %716 = vst.msk [vmem:[#allocation2 + $0xe8] sm:$0xff] %vm686_vm1, %v683_v31  ;;  %v733_v30 = vld [vmem:[#allocation2 + $0x50] sm:$0xff] (!%p1296_p5)  ;;  %v780_v33 = vmax.f32 (!%p1296_p5), %v748_v29, 0.0 }
 0x200   : > { %v565_v36 = vpop.f32.mrb[28].mxu0  ;;  %v645_v37 = vpop.f32.mrb[28].mxu1  ;;  %v749_v31 = vld [vmem:[#allocation2 + $0xd0] sm:$0xff] (!%p1296_p5)  ;;  %1391 = vmatmul.mubr.msk.f32.gmra.mrb[6].mxu0 (!%p1296_p5), %vm686_vm1, %v762_v24  ;;  %1415 = vmatmul.mubr.msk.f32.gmra.mrb[6].mxu1 (!%p1296_p5), %vm686_vm1, %v778_v25 }
 0x201   : > { %v668_v38 = vadd.f32 %v565_v36, %v315_v34  ;;  %v684_v39 = vadd.f32 %v645_v37, %v331_v35  ;;  %v567_v40 = vpop.f32.mrb[29].mxu0  ;;  %v647_v41 = vpop.f32.mrb[29].mxu1  ;;  %722 = sbr.rel (%p1296_p5) target bundleno = 744 (0x2e8), region = 52  ;;  %1393 = vmatprep.mubr.msk.f32.mxu0 (!%p1296_p5), %vm686_vm1, %v763_v26  ;;  %1417 = vmatprep.mubr.msk.f32.mxu1 (!%p1296_p5), %vm686_vm1, %v779_v27  ;;  %v765_v34 = vmax.f32 (!%p1296_p5), %v733_v30, 0.0  ;;  %v781_v35 = vmax.f32 (!%p1296_p5), %v749_v31, 0.0  ;;  %v734_v36 = vld [vmem:[#allocation2 + $0x58] sm:$0xff] (!%p1296_p5) }
 0x202   : > { %v750_v37 = vld [vmem:[#allocation2 + $0xd8] sm:$0xff] (!%p1296_p5)  ;;  %v766_v40 = vmax.f32 (!%p1296_p5), %v734_v36, 0.0 }
 0x203   : > { %701 = vst.msk [vmem:[#allocation2 + $0x70] sm:$0xff] %vm686_vm1, %v668_v38  ;;  %717 = vst.msk [vmem:[#allocation2 + $0xf0] sm:$0xff] %vm686_vm1, %v684_v39  ;;  %v735_v38 = vld [vmem:[#allocation2 + $0x60] sm:$0xff] (!%p1296_p5)  ;;  %v782_v41 = vmax.f32 (!%p1296_p5), %v750_v37, 0.0 }
 0x204   : > { %v570_v44 = vpop.f32.mrb[30].mxu0  ;;  %v650_v45 = vpop.f32.mrb[30].mxu1  ;;  %v751_v39 = vld [vmem:[#allocation2 + $0xe0] sm:$0xff] (!%p1296_p5)  ;;  %1394 = vmatmul.mubr.msk.f32.gmra.mrb[8].mxu0 (!%p1296_p5), %vm686_vm1, %v764_v32  ;;  %1418 = vmatmul.mubr.msk.f32.gmra.mrb[8].mxu1 (!%p1296_p5), %vm686_vm1, %v780_v33 }
 0x205   : > { %v669_v46 = vadd.f32 %v570_v44, %v316_v42  ;;  %v685_v47 = vadd.f32 %v650_v45, %v332_v43  ;;  %v572_v48 = vpop.f32.mrb[31].mxu0  ;;  %v652_v49 = vpop.f32.mrb[31].mxu1  ;;  %1396 = vmatprep.mubr.msk.f32.mxu0 (!%p1296_p5), %vm686_vm1, %v765_v34  ;;  %1420 = vmatprep.mubr.msk.f32.mxu1 (!%p1296_p5), %vm686_vm1, %v781_v35  ;;  %v767_v42 = vmax.f32 (!%p1296_p5), %v735_v38, 0.0  ;;  %v783_v43 = vmax.f32 (!%p1296_p5), %v751_v39, 0.0 }
 0x206   : > { %v736_v44 = vld [vmem:[#allocation2 + $0x68] sm:$0xff] (!%p1296_p5) }
 0x207   : > { %702 = vst.msk [vmem:[#allocation2 + $0x78] sm:$0xff] %vm686_vm1, %v669_v46  ;;  %718 = vst.msk [vmem:[#allocation2 + $0xf8] sm:$0xff] %vm686_vm1, %v685_v47  ;;  %v752_v45 = vld [vmem:[#allocation2 + $0xe8] sm:$0xff] (!%p1296_p5)  ;;  %v768_v48 = vmax.f32 (!%p1296_p5), %v736_v44, 0.0 }
 0x208   : > { %1397 = vmatmul.mubr.msk.f32.gmra.mrb[10].mxu0 %vm686_vm1, %v766_v40  ;;  %1421 = vmatmul.mubr.msk.f32.gmra.mrb[10].mxu1 %vm686_vm1, %v782_v41  ;;  %v784_v49 = vmax.f32 %v752_v45, 0.0 }
 0x209   : > { %1399 = vmatprep.mubr.msk.f32.mxu0 %vm686_vm1, %v767_v42  ;;  %1423 = vmatprep.mubr.msk.f32.mxu1 %vm686_vm1, %v783_v43 }
 0x20a   : > { %v737_v46 = vld [vmem:[#allocation2 + $0x70] sm:$0xff] }
 0x20b   : > { %v753_v47 = vld [vmem:[#allocation2 + $0xf0] sm:$0xff]  ;;  %v769_v50 = vmax.f32 %v737_v46, 0.0 }
 0x20c   : > { %v785_v51 = vmax.f32 %v753_v47, 0.0  ;;  %1400 = vmatmul.mubr.msk.f32.gmra.mrb[12].mxu0 %vm686_vm1, %v768_v48  ;;  %1424 = vmatmul.mubr.msk.f32.gmra.mrb[12].mxu1 %vm686_vm1, %v784_v49 }
 0x20d   : > { %1402 = vmatprep.mubr.msk.f32.mxu0 %vm686_vm1, %v769_v50 }
 0x20e   : > { %v738_v52 = vld [vmem:[#allocation2 + $0x78] sm:$0xff]  ;;  %1426 = vmatprep.mubr.msk.f32.mxu1 %vm686_vm1, %v785_v51 }
 0x20f   : > { %v754_v53 = vld [vmem:[#allocation2 + $0xf8] sm:$0xff]  ;;  %v770_v54 = vmax.f32 %v738_v52, 0.0 }
 0x210   : > { %v786_v55 = vmax.f32 %v754_v53, 0.0 }
 0x211   : > { %1403 = vmatmul.mubr.msk.f32.gmra.mrb[14].mxu0 %vm686_vm1, %v770_v54 }
 0x212   : > { %1427 = vmatmul.mubr.msk.f32.gmra.mrb[14].mxu1 %vm686_vm1, %v786_v55 }
 0x2c7   : > { %v1383_v56 = vpop.f32.mrb[0].mxu0  ;;  %v1407_v57 = vpop.f32.mrb[0].mxu1 }
 0x2c8   : > { %1113 = vst.msk [vmem:[%s2242_s28 + $0x8] sm:$0xff] %vm686_vm1, %v1383_v56  ;;  %1129 = vst.msk [vmem:[%s2242_s28 + $0x88] sm:$0xff] %vm686_vm1, %v1407_v57  ;;  %v953_v58 = vpop.f32.mrb[1].mxu0  ;;  %v1033_v59 = vpop.f32.mrb[1].mxu1 }
 0x2c9   : > { %1112 = vst.msk [vmem:[%s2242_s28] sm:$0xff] %vm686_vm1, %v953_v58  ;;  %1128 = vst.msk [vmem:[%s2242_s28 + $0x80] sm:$0xff] %vm686_vm1, %v1033_v59 }
 0x2cb   : > { %v1386_v60 = vpop.f32.mrb[2].mxu0  ;;  %v1410_v61 = vpop.f32.mrb[2].mxu1 }
 0x2cc   : > { %1115 = vst.msk [vmem:[%s2242_s28 + $0x18] sm:$0xff] %vm686_vm1, %v1386_v60  ;;  %1131 = vst.msk [vmem:[%s2242_s28 + $0x98] sm:$0xff] %vm686_vm1, %v1410_v61  ;;  %v963_v62 = vpop.f32.mrb[3].mxu0  ;;  %v1043_v63 = vpop.f32.mrb[3].mxu1 }
 0x2cd   : > { %1114 = vst.msk [vmem:[%s2242_s28 + $0x10] sm:$0xff] %vm686_vm1, %v963_v62  ;;  %1130 = vst.msk [vmem:[%s2242_s28 + $0x90] sm:$0xff] %vm686_vm1, %v1043_v63 }
 0x2cf   : > { %v1389_v0 = vpop.f32.mrb[4].mxu0  ;;  %v1413_v1 = vpop.f32.mrb[4].mxu1 }
 0x2d0   : > { %1117 = vst.msk [vmem:[%s2242_s28 + $0x28] sm:$0xff] %vm686_vm1, %v1389_v0  ;;  %1133 = vst.msk [vmem:[%s2242_s28 + $0xa8] sm:$0xff] %vm686_vm1, %v1413_v1  ;;  %v973_v2 = vpop.f32.mrb[5].mxu0  ;;  %v1053_v3 = vpop.f32.mrb[5].mxu1 }
 0x2d1   : > { %1116 = vst.msk [vmem:[%s2242_s28 + $0x20] sm:$0xff] %vm686_vm1, %v973_v2  ;;  %1132 = vst.msk [vmem:[%s2242_s28 + $0xa0] sm:$0xff] %vm686_vm1, %v1053_v3 }
 0x2d3   : > { %v1392_v4 = vpop.f32.mrb[6].mxu0  ;;  %v1416_v5 = vpop.f32.mrb[6].mxu1 }
 0x2d4   : > { %1119 = vst.msk [vmem:[%s2242_s28 + $0x38] sm:$0xff] %vm686_vm1, %v1392_v4  ;;  %1135 = vst.msk [vmem:[%s2242_s28 + $0xb8] sm:$0xff] %vm686_vm1, %v1416_v5  ;;  %v983_v6 = vpop.f32.mrb[7].mxu0  ;;  %v1063_v7 = vpop.f32.mrb[7].mxu1 }
 0x2d5   : > { %1118 = vst.msk [vmem:[%s2242_s28 + $0x30] sm:$0xff] %vm686_vm1, %v983_v6  ;;  %1134 = vst.msk [vmem:[%s2242_s28 + $0xb0] sm:$0xff] %vm686_vm1, %v1063_v7 }
 0x2d7   : > { %v1395_v8 = vpop.f32.mrb[8].mxu0  ;;  %v1419_v9 = vpop.f32.mrb[8].mxu1 }
 0x2d8   : > { %1121 = vst.msk [vmem:[%s2242_s28 + $0x48] sm:$0xff] %vm686_vm1, %v1395_v8  ;;  %1137 = vst.msk [vmem:[%s2242_s28 + $0xc8] sm:$0xff] %vm686_vm1, %v1419_v9  ;;  %v993_v10 = vpop.f32.mrb[9].mxu0  ;;  %v1073_v11 = vpop.f32.mrb[9].mxu1 }
 0x2d9   : > { %1120 = vst.msk [vmem:[%s2242_s28 + $0x40] sm:$0xff] %vm686_vm1, %v993_v10  ;;  %1136 = vst.msk [vmem:[%s2242_s28 + $0xc0] sm:$0xff] %vm686_vm1, %v1073_v11 }
 0x2db   : > { %v1398_v12 = vpop.f32.mrb[10].mxu0  ;;  %v1422_v13 = vpop.f32.mrb[10].mxu1 }
 0x2dc   : > { %1123 = vst.msk [vmem:[%s2242_s28 + $0x58] sm:$0xff] %vm686_vm1, %v1398_v12  ;;  %1139 = vst.msk [vmem:[%s2242_s28 + $0xd8] sm:$0xff] %vm686_vm1, %v1422_v13  ;;  %v1003_v14 = vpop.f32.mrb[11].mxu0  ;;  %v1083_v15 = vpop.f32.mrb[11].mxu1 }
 0x2dd   : > { %1122 = vst.msk [vmem:[%s2242_s28 + $0x50] sm:$0xff] %vm686_vm1, %v1003_v14  ;;  %1138 = vst.msk [vmem:[%s2242_s28 + $0xd0] sm:$0xff] %vm686_vm1, %v1083_v15 }
 0x2df   : > { %v1401_v16 = vpop.f32.mrb[12].mxu0  ;;  %v1425_v17 = vpop.f32.mrb[12].mxu1 }
 0x2e0   : > { %1125 = vst.msk [vmem:[%s2242_s28 + $0x68] sm:$0xff] %vm686_vm1, %v1401_v16  ;;  %1141 = vst.msk [vmem:[%s2242_s28 + $0xe8] sm:$0xff] %vm686_vm1, %v1425_v17  ;;  %v1013_v18 = vpop.f32.mrb[13].mxu0  ;;  %v1093_v19 = vpop.f32.mrb[13].mxu1 }
 0x2e1   : > { %1124 = vst.msk [vmem:[%s2242_s28 + $0x60] sm:$0xff] %vm686_vm1, %v1013_v18  ;;  %1140 = vst.msk [vmem:[%s2242_s28 + $0xe0] sm:$0xff] %vm686_vm1, %v1093_v19 }
 0x2e4   : > { %v1404_v20 = vpop.f32.mrb[14].mxu0 }
 0x2e5   : > { %v1428_v21 = vpop.f32.mrb[14].mxu1  ;;  %1127 = vst.msk [vmem:[%s2242_s28 + $0x78] sm:$0xff] %vm686_vm1, %v1404_v20  ;;  %v1023_v22 = vpop.f32.mrb[15].mxu0 }
 0x2e6   : > { %1143 = vst.msk [vmem:[%s2242_s28 + $0xf8] sm:$0xff] %vm686_vm1, %v1428_v21  ;;  %v1103_v23 = vpop.f32.mrb[15].mxu1  ;;  %1126 = vst.msk [vmem:[%s2242_s28 + $0x70] sm:$0xff] %vm686_vm1, %v1023_v22 }
 0x2e7   : > { %1142 = vst.msk [vmem:[%s2242_s28 + $0xf0] sm:$0xff] %vm686_vm1, %v1103_v23 }
 0x2e8 PF: > { %s2684_s21 = sld [smem:[#allocation17_spill]]  ;;  %s2686_s5 = sld [smem:[#allocation20_spill]] }
 0x2e9   : > { %s2687_s26 = sld [smem:[#allocation25_spill]]  ;;  %s1158_s7 = sshll.u32 %s2242_s28, 4  ;;  %s2541_s7 = int_to_ptr.vmem [resolvable:$true] %s1158_s7 }
 0x2ea   : > { %s2545_s18 = scalar_lea.sflag [#allocation5], %s257_s13  ;;  %s1760_s6 = scalar_lea.vmem %s2541_s7, 4096 }
 0x2eb   : > { %p1761_p2 = scmp.ne.s32.totalorder %s2541_s7, %s1760_s6  ;;  %s1926_s2 = smov [#allocation9]  }
 0x2ec   : > { %s1764_s29 = sshll.u32 %s1926_s2, 4  ;;  %s1765_s29 = int_to_ptr.vmem [resolvable:$false] %s1764_s29 }
 0x2ed   : > { %s1766_s10 = scalar_lea.vmem %s1765_s29, 8192  ;;  %p1767_p4 = scmp.lt.s32.totalorder %s2541_s7, %s1765_s29 }
 0x2ee   : > { %s1336_s11 = sshll.u32 %s2684_s21, 12  ;;  %p2688_p10 = scmp.ne.s32.totalorder %s2686_s5, 0 }
 0x2ef   : > { %s2538_s4 = scalar_lea.hbm %s2687_s26, %s1336_s11  ;;  %p1768_p8 = scmp.lt.s32.totalorder %s1766_s10, %s1760_s6 }
 0x2f0   : > { %p1762_p7 = pnand %p1761_p2, %p2688_p10 }
 0x2f1   : > { %p1769_p12 = por %p1768_p8, %p1767_p4 }
 0x2f2   : > { %p1763_p11 = pneg %p1762_p7 }
 0x2f4   : > { %p1770_p13 = pnand %p1769_p12, %p1763_p11 }
 0x2f6   : > { %1773 = shalt.err (!%p1770_p13)
}
 0x2f7   : > { %s1774_s13 = scalar_lea.hbm %s2538_s4, 4096  ;;  %s1778_s8 = scalar_lea.hbm %s2687_s26, 8192 }
 0x2f8   : > { %p1775_p6 = scmp.ne.s32.totalorder %s2538_s4, %s1774_s13  ;;  %p1779_p3 = scmp.lt.u32.totalorder %s2538_s4, %s2687_s26 }
 0x2f9   : > { %p1780_p9 = scmp.lt.u32.totalorder %s1778_s8, %s1774_s13  ;;  %p1782_p2 = scmp.lt.u32.totalorder %s1774_s13, %s2538_s4 }
 0x2fa   : > { %p1776_p0 = pnand %p1775_p6, %p2688_p10 }
 0x2fb   : > { %p1781_p5 = por %p1780_p9, %p1779_p3 }
 0x2fc   : > { %p1777_p1 = pneg %p1776_p0 }
 0x2fd   : > { %p1783_p7 = por %p1782_p2, %p1781_p5 }
 0x2ff   : > { %p1784_p11 = pnand %p1783_p7, %p1777_p1 }
 0x301   : > { %1787 = shalt.err (!%p1784_p11)
}
 0x302   : > { %s1927_s11 = smov 128   ;;  %s1928_s22 = smov 8  }
 0x303   : > { %1529 = dma.vmem_to_hbm [thread:$0]  (%p2688_p10), %s2541_s7, 4096, %s2538_s4, %s2545_s18, %s1927_s11, %s1927_s11, %s1928_s22  }
 0x304 PF: > { %s2689_s9 = sld [smem:[#allocation14_spill]]  ;;  %s2690_s6 = sld [smem:[#allocation21_spill]] }
 0x305   : > { %p1549_p4 = scmp.ge.s32.totalorder %s1914_s25, 2 }
 0x30a   : > { %s1173_s2 = sand.u32 1, %s2689_s9   ;;  %p2691_p8 = scmp.ne.s32.totalorder %s2690_s6, 0 }
 0x30b   : > { %s1174_s29 = scalar_lea.sflag [#allocation5], %s1173_s2 }
 0x30c   : > { %p1543_p12 = pnand %p1549_p4, %p2691_p8 }
 0x30e   : > { %1857 = dma.done.wait (!%p1543_p12), %s1174_s29, 4096  }
 0x30f   : > { %1859 = vsyncadd (!%p1543_p12), %s1174_s29, 4294963200  ;;  %s22_s25 = sadd.s32 1, %s1914_s25   ;;  %s2693_s13 = sld [smem:[#allocation15_spill]] }
 0x310   : > { %p2574_p13 = scmp.ge.s32.totalorder %s22_s25, 6   ;;  %s2694_s5 = smov %s2115_s12 }
 0x311   : > { %s2695_s4 = sld [smem:[#allocation22_spill]]  ;;  %s2696_s7 = sld [smem:[#allocation23_spill]] }
 0x312   : > { %s2703_s18 = smov %s1890_s19  ;;  %s2704_s19 = smov %s1894_s20 }
 0x313   : > { %s2705_s20 = smov %s2694_s5  ;;  %s2706_s21 = smov %s1906_s23 }
 0x314   : > { %s2707_s22 = smov %s1910_s24  ;;  %21 = sbr.rel (!%p2574_p13) target bundleno = 15 (0xf), region = 102 }
 0x315   : > { %s2697_s12 = smov %s2693_s13  ;;  %s2698_s13 = smov %s1870_s14 }
 0x316   : > { %s2699_s14 = smov %s2112_s15  ;;  %s2700_s15 = smov %s1878_s16 }
 0x317   : > { %s2701_s16 = smov %s1882_s17  ;;  %s2702_s17 = smov %s2168_s30 }
 0x318   : > { %s2708_s23 = smov %s2695_s4  ;;  %s2709_s24 = smov %s2696_s7 }
 0x31b   :  { %1179 = vsyncpa [#allocation4], 1 }
 0x31c   :  { %1181 = vsyncpa [#allocation4 + $0x1], 1 }
 0x31d   :  { %1182 = vsyncpa [#allocation7], 1 }
 0x31e   :  { %1184 = vsyncpa [#allocation7 + $0x1], 1 }
 0x31f   :  { %1185 = vsyncpa [#allocation5], 1 }
 0x320   :  { %1187 = vsyncpa [#allocation5 + $0x1], 1 }

</bundles_post_ra>
